<compile_context>
chip_gen: v5e
topology: v5e:2x2
jax: 0.10.0
libtpu: 0.0.40
codegen_flags: <defaults>
</compile_context>

<pallas_src>
import functools

import jax
import jax.numpy as jnp
from jax import lax
from jax.experimental import pallas as pl
from jax.experimental.pallas import tpu as pltpu

K = 7      # conv kernel size
PAD = 3    # conv padding ("same")


def _pick_chunk(tc):
    """Channels processed per inner (unrolled) step of the reduction."""
    for ch in (32, 16, 8, 4, 2, 1):
        if tc % ch == 0:
            return ch
    return 1


def _spatial_attention_kernel(w_ref, x_ref, o_ref, sum_ref, max_ref, pad_ref,
                              *, C, H, W, TC):
    # w_ref:   SMEM (2*K*K + 1,) f32   flattened conv weight (I=[avg,max]) + bias
    # x_ref:   VMEM (1, TC, H, W)      one channel tile of one batch element
    # o_ref:   VMEM (1, 1, H, W)
    # sum_ref: VMEM (H, W) f32         running channel sum
    # max_ref: VMEM (H, W) f32         running channel max
    # pad_ref: VMEM (2, H+6, W+6) f32  zero-padded avg/max maps for the conv
    c_idx = pl.program_id(1)
    last_c = pl.num_programs(1) - 1

    @pl.when(c_idx == 0)
    def _():
        sum_ref[...] = jnp.zeros((H, W), jnp.float32)
        max_ref[...] = jnp.full((H, W), -jnp.inf, jnp.float32)

    CH = _pick_chunk(TC)
    nchunks = TC // CH

    def accum(base, s, m):
        # Plane-at-a-time: only ~3 (H, W) f32 values live in vregs at once.
        for t in range(CH):
            plane = x_ref[0, base + t].astype(jnp.float32)     # (H, W)
            s = s + plane
            m = jnp.maximum(m, plane)
        return s, m

    s = sum_ref[...]
    m = max_ref[...]
    if nchunks == 1:
        s, m = accum(0, s, m)
    else:
        def body(j, carry):
            return accum(j * CH, *carry)
        s, m = lax.fori_loop(0, nchunks, body, (s, m), unroll=nchunks <= 64)
    sum_ref[...] = s
    max_ref[...] = m

    @pl.when(c_idx == last_c)
    def _():
        avg = s * (1.0 / C)                                     # (H, W) channel mean
        mx = m                                                  # (H, W) channel max

        # Zero-padded maps -> every conv tap is a plain static slice.
        pad_ref[...] = jnp.zeros((2, H + 2 * PAD, W + 2 * PAD), jnp.float32)
        pad_ref[0, PAD:PAD + H, PAD:PAD + W] = avg
        pad_ref[1, PAD:PAD + H, PAD:PAD + W] = mx

        acc = jnp.full((H, W), w_ref[2 * K * K], dtype=jnp.float32)   # bias
        for kh in range(K):
            for kw in range(K):
                acc = acc + (
                    w_ref[kh * K + kw] * pad_ref[0, kh:kh + H, kw:kw + W]
                    + w_ref[K * K + kh * K + kw] * pad_ref[1, kh:kh + H, kw:kw + W])

        o_ref[0, 0] = jax.nn.sigmoid(acc).astype(o_ref.dtype)


def _choose_channel_tile(C, H, W, itemsize, budget_bytes=12 * 1024 * 1024):
    """Largest channel tile (divisor of C) whose padded VMEM block fits budget."""
    hp = ((H + 7) // 8) * 8
    wp = ((W + 127) // 128) * 128
    per_ch = hp * wp * itemsize
    if C * per_ch <= budget_bytes:
        return C                       # NC == 1 for all ResNet-50 stages
    for tc in range(C - 1, 0, -1):
        if C % tc == 0 and tc * per_ch <= budget_bytes:
            return tc
    return 1


def spatial_attention(x, weight, bias, *, channel_tile=None):
    """x: (N, C, H, W); weight: (1, 2, 7, 7); bias: (1,) -> (N, 1, H, W)."""
    N, C, H, W = x.shape
    itemsize = jnp.dtype(x.dtype).itemsize
    TC = (channel_tile if channel_tile is not None
          else _choose_channel_tile(C, H, W, itemsize))
    assert C % TC == 0, (C, TC)
    NC = C // TC

    # Flattened conv weights + bias -> SMEM scalars: [avg taps(49), max taps(49), bias].
    wflat = jnp.concatenate(
        [weight.reshape(-1), bias.reshape(-1)]).astype(jnp.float32)   # (99,)

    kernel = functools.partial(_spatial_attention_kernel, C=C, H=H, W=W, TC=TC)

    out = pl.pallas_call(
        kernel,
        out_shape=jax.ShapeDtypeStruct((N, 1, H, W), x.dtype),
        grid_spec=pltpu.PrefetchScalarGridSpec(
            num_scalar_prefetch=0,
            grid=(N, NC),
            in_specs=[
                pl.BlockSpec(memory_space=pltpu.MemorySpace.SMEM),       # weights+bias
                pl.BlockSpec((1, TC, H, W), lambda n, c: (n, c, 0, 0)),  # x tile
            ],
            out_specs=pl.BlockSpec((1, 1, H, W), lambda n, c: (n, 0, 0, 0)),
            scratch_shapes=[
                pltpu.VMEM((H, W), jnp.float32),                    # running sum
                pltpu.VMEM((H, W), jnp.float32),                    # running max
                pltpu.VMEM((2, H + 2 * PAD, W + 2 * PAD), jnp.float32),  # padded maps
            ],
        ),
        compiler_params=pltpu.CompilerParams(
            dimension_semantics=("parallel", "arbitrary"),
            vmem_limit_bytes=32 * 1024 * 1024,
        ),
    )(wflat, x)
    return out


def ref_spatial_attention(x, weight, bias):
    """Pure-JAX reference mirroring the PyTorch forward."""
    avg = jnp.mean(x, axis=1, keepdims=True)
    mx = jnp.max(x, axis=1, keepdims=True)
    cat = jnp.concatenate([avg, mx], axis=1)
    out = lax.conv_general_dilated(
        cat, weight, window_strides=(1, 1),
        padding=[(PAD, PAD), (PAD, PAD)],
        dimension_numbers=("NCHW", "OIHW", "NCHW"))
    return jax.nn.sigmoid(out + bias.reshape(1, -1, 1, 1))


if __name__ == "__main__":
    key = jax.random.PRNGKey(0)
    kw_, kb_, kx1, kx2 = jax.random.split(key, 4)

    # Deterministic synthetic parameters (nn.Conv2d(2, 1, 7, padding=3)).
    weight = jax.random.normal(kw_, (1, 2, K, K), dtype=jnp.float32) * 0.1
    bias = jax.random.normal(kb_, (1,), dtype=jnp.float32) * 0.1

    # Test 1: tiny shapes, single grid step, fully unrolled reduction.
    x1 = jax.random.normal(kx1, (2, 4, 16, 16), dtype=jnp.float32)
    o1 = jax.block_until_ready(spatial_attention(x1, weight, bias))
    r1 = ref_spatial_attention(x1, weight, bias)
    assert o1.shape == (2, 1, 16, 16), o1.shape
    assert jnp.allclose(o1, r1, atol=1e-5, rtol=1e-5), (
        float(jnp.max(jnp.abs(o1 - r1))))

    # Test 2: more channels -> chunked fori_loop reduction (TC == C, NC == 1).
    x2 = jax.random.normal(kx2, (2, 64, 16, 16), dtype=jnp.float32)
    o2 = jax.block_until_ready(spatial_attention(x2, weight, bias))
    r2 = ref_spatial_attention(x2, weight, bias)
    assert o2.shape == (2, 1, 16, 16), o2.shape
    assert jnp.allclose(o2, r2, atol=1e-5, rtol=1e-5), (
        float(jnp.max(jnp.abs(o2 - r2))))

    # Test 3: forced channel tiling -> cross-grid-step sum/max accumulation.
    o3 = jax.block_until_ready(spatial_attention(x2, weight, bias, channel_tile=16))
    assert jnp.allclose(o3, r2, atol=1e-5, rtol=1e-5), (
        float(jnp.max(jnp.abs(o3 - r2))))

    print("KERNEL_OK")
</pallas_src>

<mosaic_0001>
module attributes {stable_mosaic.version = 11 : i64} {
  func.func @_spatial_attention_kernel(%arg0: i32, %arg1: i32, %arg2: memref<99xf32, #tpu.memory_space<smem>>, %arg3: memref<1x4x16x16xf32, #tpu.memory_space<vmem>>, %arg4: memref<1x1x16x16xf32, #tpu.memory_space<vmem>>, %arg5: memref<16x16xf32, #tpu.memory_space<vmem>>, %arg6: memref<16x16xf32, #tpu.memory_space<vmem>>, %arg7: memref<2x22x22xf32, #tpu.memory_space<vmem>>) attributes {dimension_semantics = [#tpu.dimension_semantics<parallel>, #tpu.dimension_semantics<arbitrary>], iteration_bounds = array<i64: 2, 1>, scalar_prefetch = 0 : i64, scratch_operands = 3 : i64, tpu.core_type = #tpu.core_type<tc>, window_params = [{transform_indices = @transform_0, window_bounds = array<i64: 99>}, {transform_indices = @transform_1, window_bounds = array<i64: 1, 4, 16, 16>}, {transform_indices = @transform_2, window_bounds = array<i64: 1, 1, 16, 16>}]} {
    %c0_i32 = arith.constant 0 : i32
    %0 = arith.cmpi eq, %arg1, %c0_i32 : i32
    %1 = arith.extui %0 : i1 to i32
    %c0_i32_0 = arith.constant 0 : i32
    %2 = arith.cmpi ne, %1, %c0_i32_0 : i32
    scf.if %2 {
      %cst = arith.constant 0.000000e+00 : f32
      %26 = vector.broadcast %cst : f32 to vector<16x16xf32>
      %c0_23 = arith.constant 0 : index
      %c0_24 = arith.constant 0 : index
      %27 = vector.load %arg5[%c0_23, %c0_24] : memref<16x16xf32, #tpu.memory_space<vmem>>, vector<16x16xf32>
      tpu.vector_store %arg5[%c0_23, %c0_24], %26 {strides = array<i32>} : memref<16x16xf32, #tpu.memory_space<vmem>>, vector<16x16xf32>,
      %cst_25 = arith.constant 0xFF800000 : f32
      %28 = vector.broadcast %cst_25 : f32 to vector<16x16xf32>
      %c0_26 = arith.constant 0 : index
      %c0_27 = arith.constant 0 : index
      %29 = vector.load %arg6[%c0_26, %c0_27] : memref<16x16xf32, #tpu.memory_space<vmem>>, vector<16x16xf32>
      tpu.vector_store %arg6[%c0_26, %c0_27], %28 {strides = array<i32>} : memref<16x16xf32, #tpu.memory_space<vmem>>, vector<16x16xf32>,
    } else {
    }
    %c0 = arith.constant 0 : index
    %c0_1 = arith.constant 0 : index
    %3 = vector.load %arg5[%c0, %c0_1] : memref<16x16xf32, #tpu.memory_space<vmem>>, vector<16x16xf32>
    %c0_2 = arith.constant 0 : index
    %c0_3 = arith.constant 0 : index
    %4 = vector.load %arg6[%c0_2, %c0_3] : memref<16x16xf32, #tpu.memory_space<vmem>>, vector<16x16xf32>
    %c0_4 = arith.constant 0 : index
    %c0_5 = arith.constant 0 : index
    %c0_6 = arith.constant 0 : index
    %c0_7 = arith.constant 0 : index
    %5 = vector.load %arg3[%c0_4, %c0_5, %c0_6, %c0_7] : memref<1x4x16x16xf32, #tpu.memory_space<vmem>>, vector<1x1x16x16xf32>
    %6 = vector.shape_cast %5 : vector<1x1x16x16xf32> to vector<16x16xf32>
    %7 = arith.addf %3, %6 : vector<16x16xf32>
    %8 = arith.maximumf %4, %6 : vector<16x16xf32>
    %c0_8 = arith.constant 0 : index
    %c1 = arith.constant 1 : index
    %c0_9 = arith.constant 0 : index
    %c0_10 = arith.constant 0 : index
    %9 = vector.load %arg3[%c0_8, %c1, %c0_9, %c0_10] : memref<1x4x16x16xf32, #tpu.memory_space<vmem>>, vector<1x1x16x16xf32>
    %10 = vector.shape_cast %9 : vector<1x1x16x16xf32> to vector<16x16xf32>
    %11 = arith.addf %7, %10 : vector<16x16xf32>
    %12 = arith.maximumf %8, %10 : vector<16x16xf32>
    %c0_11 = arith.constant 0 : index
    %c2 = arith.constant 2 : index
    %c0_12 = arith.constant 0 : index
    %c0_13 = arith.constant 0 : index
    %13 = vector.load %arg3[%c0_11, %c2, %c0_12, %c0_13] : memref<1x4x16x16xf32, #tpu.memory_space<vmem>>, vector<1x1x16x16xf32>
    %14 = vector.shape_cast %13 : vector<1x1x16x16xf32> to vector<16x16xf32>
    %15 = arith.addf %11, %14 : vector<16x16xf32>
    %16 = arith.maximumf %12, %14 : vector<16x16xf32>
    %c0_14 = arith.constant 0 : index
    %c3 = arith.constant 3 : index
    %c0_15 = arith.constant 0 : index
    %c0_16 = arith.constant 0 : index
    %17 = vector.load %arg3[%c0_14, %c3, %c0_15, %c0_16] : memref<1x4x16x16xf32, #tpu.memory_space<vmem>>, vector<1x1x16x16xf32>
    %18 = vector.shape_cast %17 : vector<1x1x16x16xf32> to vector<16x16xf32>
    %19 = arith.addf %15, %18 : vector<16x16xf32>
    %20 = arith.maximumf %16, %18 : vector<16x16xf32>
    %c0_17 = arith.constant 0 : index
    %c0_18 = arith.constant 0 : index
    %21 = vector.load %arg5[%c0_17, %c0_18] : memref<16x16xf32, #tpu.memory_space<vmem>>, vector<16x16xf32>
    tpu.vector_store %arg5[%c0_17, %c0_18], %19 {strides = array<i32>} : memref<16x16xf32, #tpu.memory_space<vmem>>, vector<16x16xf32>,
    %c0_19 = arith.constant 0 : index
    %c0_20 = arith.constant 0 : index
    %22 = vector.load %arg6[%c0_19, %c0_20] : memref<16x16xf32, #tpu.memory_space<vmem>>, vector<16x16xf32>
    tpu.vector_store %arg6[%c0_19, %c0_20], %20 {strides = array<i32>} : memref<16x16xf32, #tpu.memory_space<vmem>>, vector<16x16xf32>,
    %c0_i32_21 = arith.constant 0 : i32
    %23 = arith.cmpi eq, %arg1, %c0_i32_21 : i32
    %24 = arith.extui %23 : i1 to i32
    %c0_i32_22 = arith.constant 0 : i32
    %25 = arith.cmpi ne, %24, %c0_i32_22 : i32
    scf.if %25 {
      %cst = arith.constant 2.500000e-01 : f32
      %26 = vector.broadcast %cst : f32 to vector<16x16xf32>
      %27 = arith.mulf %19, %26 : vector<16x16xf32>
      %cst_23 = arith.constant 0.000000e+00 : f32
      %28 = vector.broadcast %cst_23 : f32 to vector<2x22x22xf32>
      %c0_24 = arith.constant 0 : index
      %c0_25 = arith.constant 0 : index
      %c0_26 = arith.constant 0 : index
      %29 = vector.load %arg7[%c0_24, %c0_25, %c0_26] : memref<2x22x22xf32, #tpu.memory_space<vmem>>, vector<2x22x22xf32>
      tpu.vector_store %arg7[%c0_24, %c0_25, %c0_26], %28 {strides = array<i32>} : memref<2x22x22xf32, #tpu.memory_space<vmem>>, vector<2x22x22xf32>,
      %c0_27 = arith.constant 0 : index
      %c3_28 = arith.constant 3 : index
      %c3_29 = arith.constant 3 : index
      %30 = vector.load %arg7[%c0_27, %c3_28, %c3_29] : memref<2x22x22xf32, #tpu.memory_space<vmem>>, vector<1x16x16xf32>
      %31 = vector.shape_cast %30 : vector<1x16x16xf32> to vector<16x16xf32>
      %32 = vector.shape_cast %27 : vector<16x16xf32> to vector<1x16x16xf32>
      tpu.vector_store %arg7[%c0_27, %c3_28, %c3_29], %32 {strides = array<i32>} : memref<2x22x22xf32, #tpu.memory_space<vmem>>, vector<1x16x16xf32>,
      %c1_30 = arith.constant 1 : index
      %c3_31 = arith.constant 3 : index
      %c3_32 = arith.constant 3 : index
      %33 = vector.load %arg7[%c1_30, %c3_31, %c3_32] : memref<2x22x22xf32, #tpu.memory_space<vmem>>, vector<1x16x16xf32>
      %34 = vector.shape_cast %33 : vector<1x16x16xf32> to vector<16x16xf32>
      %35 = vector.shape_cast %20 : vector<16x16xf32> to vector<1x16x16xf32>
      tpu.vector_store %arg7[%c1_30, %c3_31, %c3_32], %35 {strides = array<i32>} : memref<2x22x22xf32, #tpu.memory_space<vmem>>, vector<1x16x16xf32>,
      %c98 = arith.constant 98 : index
      %36 = memref.load %arg2[%c98] : memref<99xf32, #tpu.memory_space<smem>>
      %37 = vector.broadcast %36 : f32 to vector<16x16xf32>
      %c0_33 = arith.constant 0 : index
      %38 = memref.load %arg2[%c0_33] : memref<99xf32, #tpu.memory_space<smem>>
      %c0_34 = arith.constant 0 : index
      %c0_35 = arith.constant 0 : index
      %c0_36 = arith.constant 0 : index
      %39 = vector.load %arg7[%c0_34, %c0_35, %c0_36] : memref<2x22x22xf32, #tpu.memory_space<vmem>>, vector<1x16x16xf32>
      %40 = vector.shape_cast %39 : vector<1x16x16xf32> to vector<16x16xf32>
      %41 = vector.broadcast %38 : f32 to vector<16x16xf32>
      %42 = arith.mulf %41, %40 : vector<16x16xf32>
      %c49 = arith.constant 49 : index
      %43 = memref.load %arg2[%c49] : memref<99xf32, #tpu.memory_space<smem>>
      %c1_37 = arith.constant 1 : index
      %c0_38 = arith.constant 0 : index
      %c0_39 = arith.constant 0 : index
      %44 = vector.load %arg7[%c1_37, %c0_38, %c0_39] : memref<2x22x22xf32, #tpu.memory_space<vmem>>, vector<1x16x16xf32>
      %45 = vector.shape_cast %44 : vector<1x16x16xf32> to vector<16x16xf32>
      %46 = vector.broadcast %43 : f32 to vector<16x16xf32>
      %47 = arith.mulf %46, %45 : vector<16x16xf32>
      %48 = arith.addf %42, %47 : vector<16x16xf32>
      %49 = arith.addf %37, %48 : vector<16x16xf32>
      %c1_40 = arith.constant 1 : index
      %50 = memref.load %arg2[%c1_40] : memref<99xf32, #tpu.memory_space<smem>>
      %c0_41 = arith.constant 0 : index
      %c0_42 = arith.constant 0 : index
      %c1_43 = arith.constant 1 : index
      %51 = vector.load %arg7[%c0_41, %c0_42, %c1_43] : memref<2x22x22xf32, #tpu.memory_space<vmem>>, vector<1x16x16xf32>
      %52 = vector.shape_cast %51 : vector<1x16x16xf32> to vector<16x16xf32>
      %53 = vector.broadcast %50 : f32 to vector<16x16xf32>
      %54 = arith.mulf %53, %52 : vector<16x16xf32>
      %c50 = arith.constant 50 : index
      %55 = memref.load %arg2[%c50] : memref<99xf32, #tpu.memory_space<smem>>
      %c1_44 = arith.constant 1 : index
      %c0_45 = arith.constant 0 : index
      %c1_46 = arith.constant 1 : index
      %56 = vector.load %arg7[%c1_44, %c0_45, %c1_46] : memref<2x22x22xf32, #tpu.memory_space<vmem>>, vector<1x16x16xf32>
      %57 = vector.shape_cast %56 : vector<1x16x16xf32> to vector<16x16xf32>
      %58 = vector.broadcast %55 : f32 to vector<16x16xf32>
      %59 = arith.mulf %58, %57 : vector<16x16xf32>
      %60 = arith.addf %54, %59 : vector<16x16xf32>
      %61 = arith.addf %49, %60 : vector<16x16xf32>
      %c2_47 = arith.constant 2 : index
      %62 = memref.load %arg2[%c2_47] : memref<99xf32, #tpu.memory_space<smem>>
      %c0_48 = arith.constant 0 : index
      %c0_49 = arith.constant 0 : index
      %c2_50 = arith.constant 2 : index
      %63 = vector.load %arg7[%c0_48, %c0_49, %c2_50] : memref<2x22x22xf32, #tpu.memory_space<vmem>>, vector<1x16x16xf32>
      %64 = vector.shape_cast %63 : vector<1x16x16xf32> to vector<16x16xf32>
      %65 = vector.broadcast %62 : f32 to vector<16x16xf32>
      %66 = arith.mulf %65, %64 : vector<16x16xf32>
      %c51 = arith.constant 51 : index
      %67 = memref.load %arg2[%c51] : memref<99xf32, #tpu.memory_space<smem>>
      %c1_51 = arith.constant 1 : index
      %c0_52 = arith.constant 0 : index
      %c2_53 = arith.constant 2 : index
      %68 = vector.load %arg7[%c1_51, %c0_52, %c2_53] : memref<2x22x22xf32, #tpu.memory_space<vmem>>, vector<1x16x16xf32>
      %69 = vector.shape_cast %68 : vector<1x16x16xf32> to vector<16x16xf32>
      %70 = vector.broadcast %67 : f32 to vector<16x16xf32>
      %71 = arith.mulf %70, %69 : vector<16x16xf32>
      %72 = arith.addf %66, %71 : vector<16x16xf32>
      %73 = arith.addf %61, %72 : vector<16x16xf32>
      %c3_54 = arith.constant 3 : index
      %74 = memref.load %arg2[%c3_54] : memref<99xf32, #tpu.memory_space<smem>>
      %c0_55 = arith.constant 0 : index
      %c0_56 = arith.constant 0 : index
      %c3_57 = arith.constant 3 : index
      %75 = vector.load %arg7[%c0_55, %c0_56, %c3_57] : memref<2x22x22xf32, #tpu.memory_space<vmem>>, vector<1x16x16xf32>
      %76 = vector.shape_cast %75 : vector<1x16x16xf32> to vector<16x16xf32>
      %77 = vector.broadcast %74 : f32 to vector<16x16xf32>
      %78 = arith.mulf %77, %76 : vector<16x16xf32>
      %c52 = arith.constant 52 : index
      %79 = memref.load %arg2[%c52] : memref<99xf32, #tpu.memory_space<smem>>
      %c1_58 = arith.constant 1 : index
      %c0_59 = arith.constant 0 : index
      %c3_60 = arith.constant 3 : index
      %80 = vector.load %arg7[%c1_58, %c0_59, %c3_60] : memref<2x22x22xf32, #tpu.memory_space<vmem>>, vector<1x16x16xf32>
      %81 = vector.shape_cast %80 : vector<1x16x16xf32> to vector<16x16xf32>
      %82 = vector.broadcast %79 : f32 to vector<16x16xf32>
      %83 = arith.mulf %82, %81 : vector<16x16xf32>
      %84 = arith.addf %78, %83 : vector<16x16xf32>
      %85 = arith.addf %73, %84 : vector<16x16xf32>
      %c4 = arith.constant 4 : index
      %86 = memref.load %arg2[%c4] : memref<99xf32, #tpu.memory_space<smem>>
      %c0_61 = arith.constant 0 : index
      %c0_62 = arith.constant 0 : index
      %c4_63 = arith.constant 4 : index
      %87 = vector.load %arg7[%c0_61, %c0_62, %c4_63] : memref<2x22x22xf32, #tpu.memory_space<vmem>>, vector<1x16x16xf32>
      %88 = vector.shape_cast %87 : vector<1x16x16xf32> to vector<16x16xf32>
      %89 = vector.broadcast %86 : f32 to vector<16x16xf32>
      %90 = arith.mulf %89, %88 : vector<16x16xf32>
      %c53 = arith.constant 53 : index
      %91 = memref.load %arg2[%c53] : memref<99xf32, #tpu.memory_space<smem>>
      %c1_64 = arith.constant 1 : index
      %c0_65 = arith.constant 0 : index
      %c4_66 = arith.constant 4 : index
      %92 = vector.load %arg7[%c1_64, %c0_65, %c4_66] : memref<2x22x22xf32, #tpu.memory_space<vmem>>, vector<1x16x16xf32>
      %93 = vector.shape_cast %92 : vector<1x16x16xf32> to vector<16x16xf32>
      %94 = vector.broadcast %91 : f32 to vector<16x16xf32>
      %95 = arith.mulf %94, %93 : vector<16x16xf32>
      %96 = arith.addf %90, %95 : vector<16x16xf32>
      %97 = arith.addf %85, %96 : vector<16x16xf32>
      %c5 = arith.constant 5 : index
      %98 = memref.load %arg2[%c5] : memref<99xf32, #tpu.memory_space<smem>>
      %c0_67 = arith.constant 0 : index
      %c0_68 = arith.constant 0 : index
      %c5_69 = arith.constant 5 : index
      %99 = vector.load %arg7[%c0_67, %c0_68, %c5_69] : memref<2x22x22xf32, #tpu.memory_space<vmem>>, vector<1x16x16xf32>
      %100 = vector.shape_cast %99 : vector<1x16x16xf32> to vector<16x16xf32>
      %101 = vector.broadcast %98 : f32 to vector<16x16xf32>
      %102 = arith.mulf %101, %100 : vector<16x16xf32>
      %c54 = arith.constant 54 : index
      %103 = memref.load %arg2[%c54] : memref<99xf32, #tpu.memory_space<smem>>
      %c1_70 = arith.constant 1 : index
      %c0_71 = arith.constant 0 : index
      %c5_72 = arith.constant 5 : index
      %104 = vector.load %arg7[%c1_70, %c0_71, %c5_72] : memref<2x22x22xf32, #tpu.memory_space<vmem>>, vector<1x16x16xf32>
      %105 = vector.shape_cast %104 : vector<1x16x16xf32> to vector<16x16xf32>
      %106 = vector.broadcast %103 : f32 to vector<16x16xf32>
      %107 = arith.mulf %106, %105 : vector<16x16xf32>
      %108 = arith.addf %102, %107 : vector<16x16xf32>
      %109 = arith.addf %97, %108 : vector<16x16xf32>
      %c6 = arith.constant 6 : index
      %110 = memref.load %arg2[%c6] : memref<99xf32, #tpu.memory_space<smem>>
      %c0_73 = arith.constant 0 : index
      %c0_74 = arith.constant 0 : index
      %c6_75 = arith.constant 6 : index
      %111 = vector.load %arg7[%c0_73, %c0_74, %c6_75] : memref<2x22x22xf32, #tpu.memory_space<vmem>>, vector<1x16x16xf32>
      %112 = vector.shape_cast %111 : vector<1x16x16xf32> to vector<16x16xf32>
      %113 = vector.broadcast %110 : f32 to vector<16x16xf32>
      %114 = arith.mulf %113, %112 : vector<16x16xf32>
      %c55 = arith.constant 55 : index
      %115 = memref.load %arg2[%c55] : memref<99xf32, #tpu.memory_space<smem>>
      %c1_76 = arith.constant 1 : index
      %c0_77 = arith.constant 0 : index
      %c6_78 = arith.constant 6 : index
      %116 = vector.load %arg7[%c1_76, %c0_77, %c6_78] : memref<2x22x22xf32, #tpu.memory_space<vmem>>, vector<1x16x16xf32>
      %117 = vector.shape_cast %116 : vector<1x16x16xf32> to vector<16x16xf32>
      %118 = vector.broadcast %115 : f32 to vector<16x16xf32>
      %119 = arith.mulf %118, %117 : vector<16x16xf32>
      %120 = arith.addf %114, %119 : vector<16x16xf32>
      %121 = arith.addf %109, %120 : vector<16x16xf32>
      %c7 = arith.constant 7 : index
      %122 = memref.load %arg2[%c7] : memref<99xf32, #tpu.memory_space<smem>>
      %c0_79 = arith.constant 0 : index
      %c1_80 = arith.constant 1 : index
      %c0_81 = arith.constant 0 : index
      %123 = vector.load %arg7[%c0_79, %c1_80, %c0_81] : memref<2x22x22xf32, #tpu.memory_space<vmem>>, vector<1x16x16xf32>
      %124 = vector.shape_cast %123 : vector<1x16x16xf32> to vector<16x16xf32>
      %125 = vector.broadcast %122 : f32 to vector<16x16xf32>
      %126 = arith.mulf %125, %124 : vector<16x16xf32>
      %c56 = arith.constant 56 : index
      %127 = memref.load %arg2[%c56] : memref<99xf32, #tpu.memory_space<smem>>
      %c1_82 = arith.constant 1 : index
      %c1_83 = arith.constant 1 : index
      %c0_84 = arith.constant 0 : index
      %128 = vector.load %arg7[%c1_82, %c1_83, %c0_84] : memref<2x22x22xf32, #tpu.memory_space<vmem>>, vector<1x16x16xf32>
      %129 = vector.shape_cast %128 : vector<1x16x16xf32> to vector<16x16xf32>
      %130 = vector.broadcast %127 : f32 to vector<16x16xf32>
      %131 = arith.mulf %130, %129 : vector<16x16xf32>
      %132 = arith.addf %126, %131 : vector<16x16xf32>
      %133 = arith.addf %121, %132 : vector<16x16xf32>
      %c8 = arith.constant 8 : index
      %134 = memref.load %arg2[%c8] : memref<99xf32, #tpu.memory_space<smem>>
      %c0_85 = arith.constant 0 : index
      %c1_86 = arith.constant 1 : index
      %c1_87 = arith.constant 1 : index
      %135 = vector.load %arg7[%c0_85, %c1_86, %c1_87] : memref<2x22x22xf32, #tpu.memory_space<vmem>>, vector<1x16x16xf32>
      %136 = vector.shape_cast %135 : vector<1x16x16xf32> to vector<16x16xf32>
      %137 = vector.broadcast %134 : f32 to vector<16x16xf32>
      %138 = arith.mulf %137, %136 : vector<16x16xf32>
      %c57 = arith.constant 57 : index
      %139 = memref.load %arg2[%c57] : memref<99xf32, #tpu.memory_space<smem>>
      %c1_88 = arith.constant 1 : index
      %c1_89 = arith.constant 1 : index
      %c1_90 = arith.constant 1 : index
      %140 = vector.load %arg7[%c1_88, %c1_89, %c1_90] : memref<2x22x22xf32, #tpu.memory_space<vmem>>, vector<1x16x16xf32>
      %141 = vector.shape_cast %140 : vector<1x16x16xf32> to vector<16x16xf32>
      %142 = vector.broadcast %139 : f32 to vector<16x16xf32>
      %143 = arith.mulf %142, %141 : vector<16x16xf32>
      %144 = arith.addf %138, %143 : vector<16x16xf32>
      %145 = arith.addf %133, %144 : vector<16x16xf32>
      %c9 = arith.constant 9 : index
      %146 = memref.load %arg2[%c9] : memref<99xf32, #tpu.memory_space<smem>>
      %c0_91 = arith.constant 0 : index
      %c1_92 = arith.constant 1 : index
      %c2_93 = arith.constant 2 : index
      %147 = vector.load %arg7[%c0_91, %c1_92, %c2_93] : memref<2x22x22xf32, #tpu.memory_space<vmem>>, vector<1x16x16xf32>
      %148 = vector.shape_cast %147 : vector<1x16x16xf32> to vector<16x16xf32>
      %149 = vector.broadcast %146 : f32 to vector<16x16xf32>
      %150 = arith.mulf %149, %148 : vector<16x16xf32>
      %c58 = arith.constant 58 : index
      %151 = memref.load %arg2[%c58] : memref<99xf32, #tpu.memory_space<smem>>
      %c1_94 = arith.constant 1 : index
      %c1_95 = arith.constant 1 : index
      %c2_96 = arith.constant 2 : index
      %152 = vector.load %arg7[%c1_94, %c1_95, %c2_96] : memref<2x22x22xf32, #tpu.memory_space<vmem>>, vector<1x16x16xf32>
      %153 = vector.shape_cast %152 : vector<1x16x16xf32> to vector<16x16xf32>
      %154 = vector.broadcast %151 : f32 to vector<16x16xf32>
      %155 = arith.mulf %154, %153 : vector<16x16xf32>
      %156 = arith.addf %150, %155 : vector<16x16xf32>
      %157 = arith.addf %145, %156 : vector<16x16xf32>
      %c10 = arith.constant 10 : index
      %158 = memref.load %arg2[%c10] : memref<99xf32, #tpu.memory_space<smem>>
      %c0_97 = arith.constant 0 : index
      %c1_98 = arith.constant 1 : index
      %c3_99 = arith.constant 3 : index
      %159 = vector.load %arg7[%c0_97, %c1_98, %c3_99] : memref<2x22x22xf32, #tpu.memory_space<vmem>>, vector<1x16x16xf32>
      %160 = vector.shape_cast %159 : vector<1x16x16xf32> to vector<16x16xf32>
      %161 = vector.broadcast %158 : f32 to vector<16x16xf32>
      %162 = arith.mulf %161, %160 : vector<16x16xf32>
      %c59 = arith.constant 59 : index
      %163 = memref.load %arg2[%c59] : memref<99xf32, #tpu.memory_space<smem>>
      %c1_100 = arith.constant 1 : index
      %c1_101 = arith.constant 1 : index
      %c3_102 = arith.constant 3 : index
      %164 = vector.load %arg7[%c1_100, %c1_101, %c3_102] : memref<2x22x22xf32, #tpu.memory_space<vmem>>, vector<1x16x16xf32>
      %165 = vector.shape_cast %164 : vector<1x16x16xf32> to vector<16x16xf32>
      %166 = vector.broadcast %163 : f32 to vector<16x16xf32>
      %167 = arith.mulf %166, %165 : vector<16x16xf32>
      %168 = arith.addf %162, %167 : vector<16x16xf32>
      %169 = arith.addf %157, %168 : vector<16x16xf32>
      %c11 = arith.constant 11 : index
      %170 = memref.load %arg2[%c11] : memref<99xf32, #tpu.memory_space<smem>>
      %c0_103 = arith.constant 0 : index
      %c1_104 = arith.constant 1 : index
      %c4_105 = arith.constant 4 : index
      %171 = vector.load %arg7[%c0_103, %c1_104, %c4_105] : memref<2x22x22xf32, #tpu.memory_space<vmem>>, vector<1x16x16xf32>
      %172 = vector.shape_cast %171 : vector<1x16x16xf32> to vector<16x16xf32>
      %173 = vector.broadcast %170 : f32 to vector<16x16xf32>
      %174 = arith.mulf %173, %172 : vector<16x16xf32>
      %c60 = arith.constant 60 : index
      %175 = memref.load %arg2[%c60] : memref<99xf32, #tpu.memory_space<smem>>
      %c1_106 = arith.constant 1 : index
      %c1_107 = arith.constant 1 : index
      %c4_108 = arith.constant 4 : index
      %176 = vector.load %arg7[%c1_106, %c1_107, %c4_108] : memref<2x22x22xf32, #tpu.memory_space<vmem>>, vector<1x16x16xf32>
      %177 = vector.shape_cast %176 : vector<1x16x16xf32> to vector<16x16xf32>
      %178 = vector.broadcast %175 : f32 to vector<16x16xf32>
      %179 = arith.mulf %178, %177 : vector<16x16xf32>
      %180 = arith.addf %174, %179 : vector<16x16xf32>
      %181 = arith.addf %169, %180 : vector<16x16xf32>
      %c12 = arith.constant 12 : index
      %182 = memref.load %arg2[%c12] : memref<99xf32, #tpu.memory_space<smem>>
      %c0_109 = arith.constant 0 : index
      %c1_110 = arith.constant 1 : index
      %c5_111 = arith.constant 5 : index
      %183 = vector.load %arg7[%c0_109, %c1_110, %c5_111] : memref<2x22x22xf32, #tpu.memory_space<vmem>>, vector<1x16x16xf32>
      %184 = vector.shape_cast %183 : vector<1x16x16xf32> to vector<16x16xf32>
      %185 = vector.broadcast %182 : f32 to vector<16x16xf32>
      %186 = arith.mulf %185, %184 : vector<16x16xf32>
      %c61 = arith.constant 61 : index
      %187 = memref.load %arg2[%c61] : memref<99xf32, #tpu.memory_space<smem>>
      %c1_112 = arith.constant 1 : index
      %c1_113 = arith.constant 1 : index
      %c5_114 = arith.constant 5 : index
      %188 = vector.load %arg7[%c1_112, %c1_113, %c5_114] : memref<2x22x22xf32, #tpu.memory_space<vmem>>, vector<1x16x16xf32>
      %189 = vector.shape_cast %188 : vector<1x16x16xf32> to vector<16x16xf32>
      %190 = vector.broadcast %187 : f32 to vector<16x16xf32>
      %191 = arith.mulf %190, %189 : vector<16x16xf32>
      %192 = arith.addf %186, %191 : vector<16x16xf32>
      %193 = arith.addf %181, %192 : vector<16x16xf32>
      %c13 = arith.constant 13 : index
      %194 = memref.load %arg2[%c13] : memref<99xf32, #tpu.memory_space<smem>>
      %c0_115 = arith.constant 0 : index
      %c1_116 = arith.constant 1 : index
      %c6_117 = arith.constant 6 : index
      %195 = vector.load %arg7[%c0_115, %c1_116, %c6_117] : memref<2x22x22xf32, #tpu.memory_space<vmem>>, vector<1x16x16xf32>
      %196 = vector.shape_cast %195 : vector<1x16x16xf32> to vector<16x16xf32>
      %197 = vector.broadcast %194 : f32 to vector<16x16xf32>
      %198 = arith.mulf %197, %196 : vector<16x16xf32>
      %c62 = arith.constant 62 : index
      %199 = memref.load %arg2[%c62] : memref<99xf32, #tpu.memory_space<smem>>
      %c1_118 = arith.constant 1 : index
      %c1_119 = arith.constant 1 : index
      %c6_120 = arith.constant 6 : index
      %200 = vector.load %arg7[%c1_118, %c1_119, %c6_120] : memref<2x22x22xf32, #tpu.memory_space<vmem>>, vector<1x16x16xf32>
      %201 = vector.shape_cast %200 : vector<1x16x16xf32> to vector<16x16xf32>
      %202 = vector.broadcast %199 : f32 to vector<16x16xf32>
      %203 = arith.mulf %202, %201 : vector<16x16xf32>
      %204 = arith.addf %198, %203 : vector<16x16xf32>
      %205 = arith.addf %193, %204 : vector<16x16xf32>
      %c14 = arith.constant 14 : index
      %206 = memref.load %arg2[%c14] : memref<99xf32, #tpu.memory_space<smem>>
      %c0_121 = arith.constant 0 : index
      %c2_122 = arith.constant 2 : index
      %c0_123 = arith.constant 0 : index
      %207 = vector.load %arg7[%c0_121, %c2_122, %c0_123] : memref<2x22x22xf32, #tpu.memory_space<vmem>>, vector<1x16x16xf32>
      %208 = vector.shape_cast %207 : vector<1x16x16xf32> to vector<16x16xf32>
      %209 = vector.broadcast %206 : f32 to vector<16x16xf32>
      %210 = arith.mulf %209, %208 : vector<16x16xf32>
      %c63 = arith.constant 63 : index
      %211 = memref.load %arg2[%c63] : memref<99xf32, #tpu.memory_space<smem>>
      %c1_124 = arith.constant 1 : index
      %c2_125 = arith.constant 2 : index
      %c0_126 = arith.constant 0 : index
      %212 = vector.load %arg7[%c1_124, %c2_125, %c0_126] : memref<2x22x22xf32, #tpu.memory_space<vmem>>, vector<1x16x16xf32>
      %213 = vector.shape_cast %212 : vector<1x16x16xf32> to vector<16x16xf32>
      %214 = vector.broadcast %211 : f32 to vector<16x16xf32>
      %215 = arith.mulf %214, %213 : vector<16x16xf32>
      %216 = arith.addf %210, %215 : vector<16x16xf32>
      %217 = arith.addf %205, %216 : vector<16x16xf32>
      %c15 = arith.constant 15 : index
      %218 = memref.load %arg2[%c15] : memref<99xf32, #tpu.memory_space<smem>>
      %c0_127 = arith.constant 0 : index
      %c2_128 = arith.constant 2 : index
      %c1_129 = arith.constant 1 : index
      %219 = vector.load %arg7[%c0_127, %c2_128, %c1_129] : memref<2x22x22xf32, #tpu.memory_space<vmem>>, vector<1x16x16xf32>
      %220 = vector.shape_cast %219 : vector<1x16x16xf32> to vector<16x16xf32>
      %221 = vector.broadcast %218 : f32 to vector<16x16xf32>
      %222 = arith.mulf %221, %220 : vector<16x16xf32>
      %c64 = arith.constant 64 : index
      %223 = memref.load %arg2[%c64] : memref<99xf32, #tpu.memory_space<smem>>
      %c1_130 = arith.constant 1 : index
      %c2_131 = arith.constant 2 : index
      %c1_132 = arith.constant 1 : index
      %224 = vector.load %arg7[%c1_130, %c2_131, %c1_132] : memref<2x22x22xf32, #tpu.memory_space<vmem>>, vector<1x16x16xf32>
      %225 = vector.shape_cast %224 : vector<1x16x16xf32> to vector<16x16xf32>
      %226 = vector.broadcast %223 : f32 to vector<16x16xf32>
      %227 = arith.mulf %226, %225 : vector<16x16xf32>
      %228 = arith.addf %222, %227 : vector<16x16xf32>
      %229 = arith.addf %217, %228 : vector<16x16xf32>
      %c16 = arith.constant 16 : index
      %230 = memref.load %arg2[%c16] : memref<99xf32, #tpu.memory_space<smem>>
      %c0_133 = arith.constant 0 : index
      %c2_134 = arith.constant 2 : index
      %c2_135 = arith.constant 2 : index
      %231 = vector.load %arg7[%c0_133, %c2_134, %c2_135] : memref<2x22x22xf32, #tpu.memory_space<vmem>>, vector<1x16x16xf32>
      %232 = vector.shape_cast %231 : vector<1x16x16xf32> to vector<16x16xf32>
      %233 = vector.broadcast %230 : f32 to vector<16x16xf32>
      %234 = arith.mulf %233, %232 : vector<16x16xf32>
      %c65 = arith.constant 65 : index
      %235 = memref.load %arg2[%c65] : memref<99xf32, #tpu.memory_space<smem>>
      %c1_136 = arith.constant 1 : index
      %c2_137 = arith.constant 2 : index
      %c2_138 = arith.constant 2 : index
      %236 = vector.load %arg7[%c1_136, %c2_137, %c2_138] : memref<2x22x22xf32, #tpu.memory_space<vmem>>, vector<1x16x16xf32>
      %237 = vector.shape_cast %236 : vector<1x16x16xf32> to vector<16x16xf32>
      %238 = vector.broadcast %235 : f32 to vector<16x16xf32>
      %239 = arith.mulf %238, %237 : vector<16x16xf32>
      %240 = arith.addf %234, %239 : vector<16x16xf32>
      %241 = arith.addf %229, %240 : vector<16x16xf32>
      %c17 = arith.constant 17 : index
      %242 = memref.load %arg2[%c17] : memref<99xf32, #tpu.memory_space<smem>>
      %c0_139 = arith.constant 0 : index
      %c2_140 = arith.constant 2 : index
      %c3_141 = arith.constant 3 : index
      %243 = vector.load %arg7[%c0_139, %c2_140, %c3_141] : memref<2x22x22xf32, #tpu.memory_space<vmem>>, vector<1x16x16xf32>
      %244 = vector.shape_cast %243 : vector<1x16x16xf32> to vector<16x16xf32>
      %245 = vector.broadcast %242 : f32 to vector<16x16xf32>
      %246 = arith.mulf %245, %244 : vector<16x16xf32>
      %c66 = arith.constant 66 : index
      %247 = memref.load %arg2[%c66] : memref<99xf32, #tpu.memory_space<smem>>
      %c1_142 = arith.constant 1 : index
      %c2_143 = arith.constant 2 : index
      %c3_144 = arith.constant 3 : index
      %248 = vector.load %arg7[%c1_142, %c2_143, %c3_144] : memref<2x22x22xf32, #tpu.memory_space<vmem>>, vector<1x16x16xf32>
      %249 = vector.shape_cast %248 : vector<1x16x16xf32> to vector<16x16xf32>
      %250 = vector.broadcast %247 : f32 to vector<16x16xf32>
      %251 = arith.mulf %250, %249 : vector<16x16xf32>
      %252 = arith.addf %246, %251 : vector<16x16xf32>
      %253 = arith.addf %241, %252 : vector<16x16xf32>
      %c18 = arith.constant 18 : index
      %254 = memref.load %arg2[%c18] : memref<99xf32, #tpu.memory_space<smem>>
      %c0_145 = arith.constant 0 : index
      %c2_146 = arith.constant 2 : index
      %c4_147 = arith.constant 4 : index
      %255 = vector.load %arg7[%c0_145, %c2_146, %c4_147] : memref<2x22x22xf32, #tpu.memory_space<vmem>>, vector<1x16x16xf32>
      %256 = vector.shape_cast %255 : vector<1x16x16xf32> to vector<16x16xf32>
      %257 = vector.broadcast %254 : f32 to vector<16x16xf32>
      %258 = arith.mulf %257, %256 : vector<16x16xf32>
      %c67 = arith.constant 67 : index
      %259 = memref.load %arg2[%c67] : memref<99xf32, #tpu.memory_space<smem>>
      %c1_148 = arith.constant 1 : index
      %c2_149 = arith.constant 2 : index
      %c4_150 = arith.constant 4 : index
      %260 = vector.load %arg7[%c1_148, %c2_149, %c4_150] : memref<2x22x22xf32, #tpu.memory_space<vmem>>, vector<1x16x16xf32>
      %261 = vector.shape_cast %260 : vector<1x16x16xf32> to vector<16x16xf32>
      %262 = vector.broadcast %259 : f32 to vector<16x16xf32>
      %263 = arith.mulf %262, %261 : vector<16x16xf32>
      %264 = arith.addf %258, %263 : vector<16x16xf32>
      %265 = arith.addf %253, %264 : vector<16x16xf32>
      %c19 = arith.constant 19 : index
      %266 = memref.load %arg2[%c19] : memref<99xf32, #tpu.memory_space<smem>>
      %c0_151 = arith.constant 0 : index
      %c2_152 = arith.constant 2 : index
      %c5_153 = arith.constant 5 : index
      %267 = vector.load %arg7[%c0_151, %c2_152, %c5_153] : memref<2x22x22xf32, #tpu.memory_space<vmem>>, vector<1x16x16xf32>
      %268 = vector.shape_cast %267 : vector<1x16x16xf32> to vector<16x16xf32>
      %269 = vector.broadcast %266 : f32 to vector<16x16xf32>
      %270 = arith.mulf %269, %268 : vector<16x16xf32>
      %c68 = arith.constant 68 : index
      %271 = memref.load %arg2[%c68] : memref<99xf32, #tpu.memory_space<smem>>
      %c1_154 = arith.constant 1 : index
      %c2_155 = arith.constant 2 : index
      %c5_156 = arith.constant 5 : index
      %272 = vector.load %arg7[%c1_154, %c2_155, %c5_156] : memref<2x22x22xf32, #tpu.memory_space<vmem>>, vector<1x16x16xf32>
      %273 = vector.shape_cast %272 : vector<1x16x16xf32> to vector<16x16xf32>
      %274 = vector.broadcast %271 : f32 to vector<16x16xf32>
      %275 = arith.mulf %274, %273 : vector<16x16xf32>
      %276 = arith.addf %270, %275 : vector<16x16xf32>
      %277 = arith.addf %265, %276 : vector<16x16xf32>
      %c20 = arith.constant 20 : index
      %278 = memref.load %arg2[%c20] : memref<99xf32, #tpu.memory_space<smem>>
      %c0_157 = arith.constant 0 : index
      %c2_158 = arith.constant 2 : index
      %c6_159 = arith.constant 6 : index
      %279 = vector.load %arg7[%c0_157, %c2_158, %c6_159] : memref<2x22x22xf32, #tpu.memory_space<vmem>>, vector<1x16x16xf32>
      %280 = vector.shape_cast %279 : vector<1x16x16xf32> to vector<16x16xf32>
      %281 = vector.broadcast %278 : f32 to vector<16x16xf32>
      %282 = arith.mulf %281, %280 : vector<16x16xf32>
      %c69 = arith.constant 69 : index
      %283 = memref.load %arg2[%c69] : memref<99xf32, #tpu.memory_space<smem>>
      %c1_160 = arith.constant 1 : index
      %c2_161 = arith.constant 2 : index
      %c6_162 = arith.constant 6 : index
      %284 = vector.load %arg7[%c1_160, %c2_161, %c6_162] : memref<2x22x22xf32, #tpu.memory_space<vmem>>, vector<1x16x16xf32>
      %285 = vector.shape_cast %284 : vector<1x16x16xf32> to vector<16x16xf32>
      %286 = vector.broadcast %283 : f32 to vector<16x16xf32>
      %287 = arith.mulf %286, %285 : vector<16x16xf32>
      %288 = arith.addf %282, %287 : vector<16x16xf32>
      %289 = arith.addf %277, %288 : vector<16x16xf32>
      %c21 = arith.constant 21 : index
      %290 = memref.load %arg2[%c21] : memref<99xf32, #tpu.memory_space<smem>>
      %c0_163 = arith.constant 0 : index
      %c3_164 = arith.constant 3 : index
      %c0_165 = arith.constant 0 : index
      %291 = vector.load %arg7[%c0_163, %c3_164, %c0_165] : memref<2x22x22xf32, #tpu.memory_space<vmem>>, vector<1x16x16xf32>
      %292 = vector.shape_cast %291 : vector<1x16x16xf32> to vector<16x16xf32>
      %293 = vector.broadcast %290 : f32 to vector<16x16xf32>
      %294 = arith.mulf %293, %292 : vector<16x16xf32>
      %c70 = arith.constant 70 : index
      %295 = memref.load %arg2[%c70] : memref<99xf32, #tpu.memory_space<smem>>
      %c1_166 = arith.constant 1 : index
      %c3_167 = arith.constant 3 : index
      %c0_168 = arith.constant 0 : index
      %296 = vector.load %arg7[%c1_166, %c3_167, %c0_168] : memref<2x22x22xf32, #tpu.memory_space<vmem>>, vector<1x16x16xf32>
      %297 = vector.shape_cast %296 : vector<1x16x16xf32> to vector<16x16xf32>
      %298 = vector.broadcast %295 : f32 to vector<16x16xf32>
      %299 = arith.mulf %298, %297 : vector<16x16xf32>
      %300 = arith.addf %294, %299 : vector<16x16xf32>
      %301 = arith.addf %289, %300 : vector<16x16xf32>
      %c22 = arith.constant 22 : index
      %302 = memref.load %arg2[%c22] : memref<99xf32, #tpu.memory_space<smem>>
      %c0_169 = arith.constant 0 : index
      %c3_170 = arith.constant 3 : index
      %c1_171 = arith.constant 1 : index
      %303 = vector.load %arg7[%c0_169, %c3_170, %c1_171] : memref<2x22x22xf32, #tpu.memory_space<vmem>>, vector<1x16x16xf32>
      %304 = vector.shape_cast %303 : vector<1x16x16xf32> to vector<16x16xf32>
      %305 = vector.broadcast %302 : f32 to vector<16x16xf32>
      %306 = arith.mulf %305, %304 : vector<16x16xf32>
      %c71 = arith.constant 71 : index
      %307 = memref.load %arg2[%c71] : memref<99xf32, #tpu.memory_space<smem>>
      %c1_172 = arith.constant 1 : index
      %c3_173 = arith.constant 3 : index
      %c1_174 = arith.constant 1 : index
      %308 = vector.load %arg7[%c1_172, %c3_173, %c1_174] : memref<2x22x22xf32, #tpu.memory_space<vmem>>, vector<1x16x16xf32>
      %309 = vector.shape_cast %308 : vector<1x16x16xf32> to vector<16x16xf32>
      %310 = vector.broadcast %307 : f32 to vector<16x16xf32>
      %311 = arith.mulf %310, %309 : vector<16x16xf32>
      %312 = arith.addf %306, %311 : vector<16x16xf32>
      %313 = arith.addf %301, %312 : vector<16x16xf32>
      %c23 = arith.constant 23 : index
      %314 = memref.load %arg2[%c23] : memref<99xf32, #tpu.memory_space<smem>>
      %c0_175 = arith.constant 0 : index
      %c3_176 = arith.constant 3 : index
      %c2_177 = arith.constant 2 : index
      %315 = vector.load %arg7[%c0_175, %c3_176, %c2_177] : memref<2x22x22xf32, #tpu.memory_space<vmem>>, vector<1x16x16xf32>
      %316 = vector.shape_cast %315 : vector<1x16x16xf32> to vector<16x16xf32>
      %317 = vector.broadcast %314 : f32 to vector<16x16xf32>
      %318 = arith.mulf %317, %316 : vector<16x16xf32>
      %c72 = arith.constant 72 : index
      %319 = memref.load %arg2[%c72] : memref<99xf32, #tpu.memory_space<smem>>
      %c1_178 = arith.constant 1 : index
      %c3_179 = arith.constant 3 : index
      %c2_180 = arith.constant 2 : index
      %320 = vector.load %arg7[%c1_178, %c3_179, %c2_180] : memref<2x22x22xf32, #tpu.memory_space<vmem>>, vector<1x16x16xf32>
      %321 = vector.shape_cast %320 : vector<1x16x16xf32> to vector<16x16xf32>
      %322 = vector.broadcast %319 : f32 to vector<16x16xf32>
      %323 = arith.mulf %322, %321 : vector<16x16xf32>
      %324 = arith.addf %318, %323 : vector<16x16xf32>
      %325 = arith.addf %313, %324 : vector<16x16xf32>
      %c24 = arith.constant 24 : index
      %326 = memref.load %arg2[%c24] : memref<99xf32, #tpu.memory_space<smem>>
      %c0_181 = arith.constant 0 : index
      %c3_182 = arith.constant 3 : index
      %c3_183 = arith.constant 3 : index
      %327 = vector.load %arg7[%c0_181, %c3_182, %c3_183] : memref<2x22x22xf32, #tpu.memory_space<vmem>>, vector<1x16x16xf32>
      %328 = vector.shape_cast %327 : vector<1x16x16xf32> to vector<16x16xf32>
      %329 = vector.broadcast %326 : f32 to vector<16x16xf32>
      %330 = arith.mulf %329, %328 : vector<16x16xf32>
      %c73 = arith.constant 73 : index
      %331 = memref.load %arg2[%c73] : memref<99xf32, #tpu.memory_space<smem>>
      %c1_184 = arith.constant 1 : index
      %c3_185 = arith.constant 3 : index
      %c3_186 = arith.constant 3 : index
      %332 = vector.load %arg7[%c1_184, %c3_185, %c3_186] : memref<2x22x22xf32, #tpu.memory_space<vmem>>, vector<1x16x16xf32>
      %333 = vector.shape_cast %332 : vector<1x16x16xf32> to vector<16x16xf32>
      %334 = vector.broadcast %331 : f32 to vector<16x16xf32>
      %335 = arith.mulf %334, %333 : vector<16x16xf32>
      %336 = arith.addf %330, %335 : vector<16x16xf32>
      %337 = arith.addf %325, %336 : vector<16x16xf32>
      %c25 = arith.constant 25 : index
      %338 = memref.load %arg2[%c25] : memref<99xf32, #tpu.memory_space<smem>>
      %c0_187 = arith.constant 0 : index
      %c3_188 = arith.constant 3 : index
      %c4_189 = arith.constant 4 : index
      %339 = vector.load %arg7[%c0_187, %c3_188, %c4_189] : memref<2x22x22xf32, #tpu.memory_space<vmem>>, vector<1x16x16xf32>
      %340 = vector.shape_cast %339 : vector<1x16x16xf32> to vector<16x16xf32>
      %341 = vector.broadcast %338 : f32 to vector<16x16xf32>
      %342 = arith.mulf %341, %340 : vector<16x16xf32>
      %c74 = arith.constant 74 : index
      %343 = memref.load %arg2[%c74] : memref<99xf32, #tpu.memory_space<smem>>
      %c1_190 = arith.constant 1 : index
      %c3_191 = arith.constant 3 : index
      %c4_192 = arith.constant 4 : index
      %344 = vector.load %arg7[%c1_190, %c3_191, %c4_192] : memref<2x22x22xf32, #tpu.memory_space<vmem>>, vector<1x16x16xf32>
      %345 = vector.shape_cast %344 : vector<1x16x16xf32> to vector<16x16xf32>
      %346 = vector.broadcast %343 : f32 to vector<16x16xf32>
      %347 = arith.mulf %346, %345 : vector<16x16xf32>
      %348 = arith.addf %342, %347 : vector<16x16xf32>
      %349 = arith.addf %337, %348 : vector<16x16xf32>
      %c26 = arith.constant 26 : index
      %350 = memref.load %arg2[%c26] : memref<99xf32, #tpu.memory_space<smem>>
      %c0_193 = arith.constant 0 : index
      %c3_194 = arith.constant 3 : index
      %c5_195 = arith.constant 5 : index
      %351 = vector.load %arg7[%c0_193, %c3_194, %c5_195] : memref<2x22x22xf32, #tpu.memory_space<vmem>>, vector<1x16x16xf32>
      %352 = vector.shape_cast %351 : vector<1x16x16xf32> to vector<16x16xf32>
      %353 = vector.broadcast %350 : f32 to vector<16x16xf32>
      %354 = arith.mulf %353, %352 : vector<16x16xf32>
      %c75 = arith.constant 75 : index
      %355 = memref.load %arg2[%c75] : memref<99xf32, #tpu.memory_space<smem>>
      %c1_196 = arith.constant 1 : index
      %c3_197 = arith.constant 3 : index
      %c5_198 = arith.constant 5 : index
      %356 = vector.load %arg7[%c1_196, %c3_197, %c5_198] : memref<2x22x22xf32, #tpu.memory_space<vmem>>, vector<1x16x16xf32>
      %357 = vector.shape_cast %356 : vector<1x16x16xf32> to vector<16x16xf32>
      %358 = vector.broadcast %355 : f32 to vector<16x16xf32>
      %359 = arith.mulf %358, %357 : vector<16x16xf32>
      %360 = arith.addf %354, %359 : vector<16x16xf32>
      %361 = arith.addf %349, %360 : vector<16x16xf32>
      %c27 = arith.constant 27 : index
      %362 = memref.load %arg2[%c27] : memref<99xf32, #tpu.memory_space<smem>>
      %c0_199 = arith.constant 0 : index
      %c3_200 = arith.constant 3 : index
      %c6_201 = arith.constant 6 : index
      %363 = vector.load %arg7[%c0_199, %c3_200, %c6_201] : memref<2x22x22xf32, #tpu.memory_space<vmem>>, vector<1x16x16xf32>
      %364 = vector.shape_cast %363 : vector<1x16x16xf32> to vector<16x16xf32>
      %365 = vector.broadcast %362 : f32 to vector<16x16xf32>
      %366 = arith.mulf %365, %364 : vector<16x16xf32>
      %c76 = arith.constant 76 : index
      %367 = memref.load %arg2[%c76] : memref<99xf32, #tpu.memory_space<smem>>
      %c1_202 = arith.constant 1 : index
      %c3_203 = arith.constant 3 : index
      %c6_204 = arith.constant 6 : index
      %368 = vector.load %arg7[%c1_202, %c3_203, %c6_204] : memref<2x22x22xf32, #tpu.memory_space<vmem>>, vector<1x16x16xf32>
      %369 = vector.shape_cast %368 : vector<1x16x16xf32> to vector<16x16xf32>
      %370 = vector.broadcast %367 : f32 to vector<16x16xf32>
      %371 = arith.mulf %370, %369 : vector<16x16xf32>
      %372 = arith.addf %366, %371 : vector<16x16xf32>
      %373 = arith.addf %361, %372 : vector<16x16xf32>
      %c28 = arith.constant 28 : index
      %374 = memref.load %arg2[%c28] : memref<99xf32, #tpu.memory_space<smem>>
      %c0_205 = arith.constant 0 : index
      %c4_206 = arith.constant 4 : index
      %c0_207 = arith.constant 0 : index
      %375 = vector.load %arg7[%c0_205, %c4_206, %c0_207] : memref<2x22x22xf32, #tpu.memory_space<vmem>>, vector<1x16x16xf32>
      %376 = vector.shape_cast %375 : vector<1x16x16xf32> to vector<16x16xf32>
      %377 = vector.broadcast %374 : f32 to vector<16x16xf32>
      %378 = arith.mulf %377, %376 : vector<16x16xf32>
      %c77 = arith.constant 77 : index
      %379 = memref.load %arg2[%c77] : memref<99xf32, #tpu.memory_space<smem>>
      %c1_208 = arith.constant 1 : index
      %c4_209 = arith.constant 4 : index
      %c0_210 = arith.constant 0 : index
      %380 = vector.load %arg7[%c1_208, %c4_209, %c0_210] : memref<2x22x22xf32, #tpu.memory_space<vmem>>, vector<1x16x16xf32>
      %381 = vector.shape_cast %380 : vector<1x16x16xf32> to vector<16x16xf32>
      %382 = vector.broadcast %379 : f32 to vector<16x16xf32>
      %383 = arith.mulf %382, %381 : vector<16x16xf32>
      %384 = arith.addf %378, %383 : vector<16x16xf32>
      %385 = arith.addf %373, %384 : vector<16x16xf32>
      %c29 = arith.constant 29 : index
      %386 = memref.load %arg2[%c29] : memref<99xf32, #tpu.memory_space<smem>>
      %c0_211 = arith.constant 0 : index
      %c4_212 = arith.constant 4 : index
      %c1_213 = arith.constant 1 : index
      %387 = vector.load %arg7[%c0_211, %c4_212, %c1_213] : memref<2x22x22xf32, #tpu.memory_space<vmem>>, vector<1x16x16xf32>
      %388 = vector.shape_cast %387 : vector<1x16x16xf32> to vector<16x16xf32>
      %389 = vector.broadcast %386 : f32 to vector<16x16xf32>
      %390 = arith.mulf %389, %388 : vector<16x16xf32>
      %c78 = arith.constant 78 : index
      %391 = memref.load %arg2[%c78] : memref<99xf32, #tpu.memory_space<smem>>
      %c1_214 = arith.constant 1 : index
      %c4_215 = arith.constant 4 : index
      %c1_216 = arith.constant 1 : index
      %392 = vector.load %arg7[%c1_214, %c4_215, %c1_216] : memref<2x22x22xf32, #tpu.memory_space<vmem>>, vector<1x16x16xf32>
      %393 = vector.shape_cast %392 : vector<1x16x16xf32> to vector<16x16xf32>
      %394 = vector.broadcast %391 : f32 to vector<16x16xf32>
      %395 = arith.mulf %394, %393 : vector<16x16xf32>
      %396 = arith.addf %390, %395 : vector<16x16xf32>
      %397 = arith.addf %385, %396 : vector<16x16xf32>
      %c30 = arith.constant 30 : index
      %398 = memref.load %arg2[%c30] : memref<99xf32, #tpu.memory_space<smem>>
      %c0_217 = arith.constant 0 : index
      %c4_218 = arith.constant 4 : index
      %c2_219 = arith.constant 2 : index
      %399 = vector.load %arg7[%c0_217, %c4_218, %c2_219] : memref<2x22x22xf32, #tpu.memory_space<vmem>>, vector<1x16x16xf32>
      %400 = vector.shape_cast %399 : vector<1x16x16xf32> to vector<16x16xf32>
      %401 = vector.broadcast %398 : f32 to vector<16x16xf32>
      %402 = arith.mulf %401, %400 : vector<16x16xf32>
      %c79 = arith.constant 79 : index
      %403 = memref.load %arg2[%c79] : memref<99xf32, #tpu.memory_space<smem>>
      %c1_220 = arith.constant 1 : index
      %c4_221 = arith.constant 4 : index
      %c2_222 = arith.constant 2 : index
      %404 = vector.load %arg7[%c1_220, %c4_221, %c2_222] : memref<2x22x22xf32, #tpu.memory_space<vmem>>, vector<1x16x16xf32>
      %405 = vector.shape_cast %404 : vector<1x16x16xf32> to vector<16x16xf32>
      %406 = vector.broadcast %403 : f32 to vector<16x16xf32>
      %407 = arith.mulf %406, %405 : vector<16x16xf32>
      %408 = arith.addf %402, %407 : vector<16x16xf32>
      %409 = arith.addf %397, %408 : vector<16x16xf32>
      %c31 = arith.constant 31 : index
      %410 = memref.load %arg2[%c31] : memref<99xf32, #tpu.memory_space<smem>>
      %c0_223 = arith.constant 0 : index
      %c4_224 = arith.constant 4 : index
      %c3_225 = arith.constant 3 : index
      %411 = vector.load %arg7[%c0_223, %c4_224, %c3_225] : memref<2x22x22xf32, #tpu.memory_space<vmem>>, vector<1x16x16xf32>
      %412 = vector.shape_cast %411 : vector<1x16x16xf32> to vector<16x16xf32>
      %413 = vector.broadcast %410 : f32 to vector<16x16xf32>
      %414 = arith.mulf %413, %412 : vector<16x16xf32>
      %c80 = arith.constant 80 : index
      %415 = memref.load %arg2[%c80] : memref<99xf32, #tpu.memory_space<smem>>
      %c1_226 = arith.constant 1 : index
      %c4_227 = arith.constant 4 : index
      %c3_228 = arith.constant 3 : index
      %416 = vector.load %arg7[%c1_226, %c4_227, %c3_228] : memref<2x22x22xf32, #tpu.memory_space<vmem>>, vector<1x16x16xf32>
      %417 = vector.shape_cast %416 : vector<1x16x16xf32> to vector<16x16xf32>
      %418 = vector.broadcast %415 : f32 to vector<16x16xf32>
      %419 = arith.mulf %418, %417 : vector<16x16xf32>
      %420 = arith.addf %414, %419 : vector<16x16xf32>
      %421 = arith.addf %409, %420 : vector<16x16xf32>
      %c32 = arith.constant 32 : index
      %422 = memref.load %arg2[%c32] : memref<99xf32, #tpu.memory_space<smem>>
      %c0_229 = arith.constant 0 : index
      %c4_230 = arith.constant 4 : index
      %c4_231 = arith.constant 4 : index
      %423 = vector.load %arg7[%c0_229, %c4_230, %c4_231] : memref<2x22x22xf32, #tpu.memory_space<vmem>>, vector<1x16x16xf32>
      %424 = vector.shape_cast %423 : vector<1x16x16xf32> to vector<16x16xf32>
      %425 = vector.broadcast %422 : f32 to vector<16x16xf32>
      %426 = arith.mulf %425, %424 : vector<16x16xf32>
      %c81 = arith.constant 81 : index
      %427 = memref.load %arg2[%c81] : memref<99xf32, #tpu.memory_space<smem>>
      %c1_232 = arith.constant 1 : index
      %c4_233 = arith.constant 4 : index
      %c4_234 = arith.constant 4 : index
      %428 = vector.load %arg7[%c1_232, %c4_233, %c4_234] : memref<2x22x22xf32, #tpu.memory_space<vmem>>, vector<1x16x16xf32>
      %429 = vector.shape_cast %428 : vector<1x16x16xf32> to vector<16x16xf32>
      %430 = vector.broadcast %427 : f32 to vector<16x16xf32>
      %431 = arith.mulf %430, %429 : vector<16x16xf32>
      %432 = arith.addf %426, %431 : vector<16x16xf32>
      %433 = arith.addf %421, %432 : vector<16x16xf32>
      %c33 = arith.constant 33 : index
      %434 = memref.load %arg2[%c33] : memref<99xf32, #tpu.memory_space<smem>>
      %c0_235 = arith.constant 0 : index
      %c4_236 = arith.constant 4 : index
      %c5_237 = arith.constant 5 : index
      %435 = vector.load %arg7[%c0_235, %c4_236, %c5_237] : memref<2x22x22xf32, #tpu.memory_space<vmem>>, vector<1x16x16xf32>
      %436 = vector.shape_cast %435 : vector<1x16x16xf32> to vector<16x16xf32>
      %437 = vector.broadcast %434 : f32 to vector<16x16xf32>
      %438 = arith.mulf %437, %436 : vector<16x16xf32>
      %c82 = arith.constant 82 : index
      %439 = memref.load %arg2[%c82] : memref<99xf32, #tpu.memory_space<smem>>
      %c1_238 = arith.constant 1 : index
      %c4_239 = arith.constant 4 : index
      %c5_240 = arith.constant 5 : index
      %440 = vector.load %arg7[%c1_238, %c4_239, %c5_240] : memref<2x22x22xf32, #tpu.memory_space<vmem>>, vector<1x16x16xf32>
      %441 = vector.shape_cast %440 : vector<1x16x16xf32> to vector<16x16xf32>
      %442 = vector.broadcast %439 : f32 to vector<16x16xf32>
      %443 = arith.mulf %442, %441 : vector<16x16xf32>
      %444 = arith.addf %438, %443 : vector<16x16xf32>
      %445 = arith.addf %433, %444 : vector<16x16xf32>
      %c34 = arith.constant 34 : index
      %446 = memref.load %arg2[%c34] : memref<99xf32, #tpu.memory_space<smem>>
      %c0_241 = arith.constant 0 : index
      %c4_242 = arith.constant 4 : index
      %c6_243 = arith.constant 6 : index
      %447 = vector.load %arg7[%c0_241, %c4_242, %c6_243] : memref<2x22x22xf32, #tpu.memory_space<vmem>>, vector<1x16x16xf32>
      %448 = vector.shape_cast %447 : vector<1x16x16xf32> to vector<16x16xf32>
      %449 = vector.broadcast %446 : f32 to vector<16x16xf32>
      %450 = arith.mulf %449, %448 : vector<16x16xf32>
      %c83 = arith.constant 83 : index
      %451 = memref.load %arg2[%c83] : memref<99xf32, #tpu.memory_space<smem>>
      %c1_244 = arith.constant 1 : index
      %c4_245 = arith.constant 4 : index
      %c6_246 = arith.constant 6 : index
      %452 = vector.load %arg7[%c1_244, %c4_245, %c6_246] : memref<2x22x22xf32, #tpu.memory_space<vmem>>, vector<1x16x16xf32>
      %453 = vector.shape_cast %452 : vector<1x16x16xf32> to vector<16x16xf32>
      %454 = vector.broadcast %451 : f32 to vector<16x16xf32>
      %455 = arith.mulf %454, %453 : vector<16x16xf32>
      %456 = arith.addf %450, %455 : vector<16x16xf32>
      %457 = arith.addf %445, %456 : vector<16x16xf32>
      %c35 = arith.constant 35 : index
      %458 = memref.load %arg2[%c35] : memref<99xf32, #tpu.memory_space<smem>>
      %c0_247 = arith.constant 0 : index
      %c5_248 = arith.constant 5 : index
      %c0_249 = arith.constant 0 : index
      %459 = vector.load %arg7[%c0_247, %c5_248, %c0_249] : memref<2x22x22xf32, #tpu.memory_space<vmem>>, vector<1x16x16xf32>
      %460 = vector.shape_cast %459 : vector<1x16x16xf32> to vector<16x16xf32>
      %461 = vector.broadcast %458 : f32 to vector<16x16xf32>
      %462 = arith.mulf %461, %460 : vector<16x16xf32>
      %c84 = arith.constant 84 : index
      %463 = memref.load %arg2[%c84] : memref<99xf32, #tpu.memory_space<smem>>
      %c1_250 = arith.constant 1 : index
      %c5_251 = arith.constant 5 : index
      %c0_252 = arith.constant 0 : index
      %464 = vector.load %arg7[%c1_250, %c5_251, %c0_252] : memref<2x22x22xf32, #tpu.memory_space<vmem>>, vector<1x16x16xf32>
      %465 = vector.shape_cast %464 : vector<1x16x16xf32> to vector<16x16xf32>
      %466 = vector.broadcast %463 : f32 to vector<16x16xf32>
      %467 = arith.mulf %466, %465 : vector<16x16xf32>
      %468 = arith.addf %462, %467 : vector<16x16xf32>
      %469 = arith.addf %457, %468 : vector<16x16xf32>
      %c36 = arith.constant 36 : index
      %470 = memref.load %arg2[%c36] : memref<99xf32, #tpu.memory_space<smem>>
      %c0_253 = arith.constant 0 : index
      %c5_254 = arith.constant 5 : index
      %c1_255 = arith.constant 1 : index
      %471 = vector.load %arg7[%c0_253, %c5_254, %c1_255] : memref<2x22x22xf32, #tpu.memory_space<vmem>>, vector<1x16x16xf32>
      %472 = vector.shape_cast %471 : vector<1x16x16xf32> to vector<16x16xf32>
      %473 = vector.broadcast %470 : f32 to vector<16x16xf32>
      %474 = arith.mulf %473, %472 : vector<16x16xf32>
      %c85 = arith.constant 85 : index
      %475 = memref.load %arg2[%c85] : memref<99xf32, #tpu.memory_space<smem>>
      %c1_256 = arith.constant 1 : index
      %c5_257 = arith.constant 5 : index
      %c1_258 = arith.constant 1 : index
      %476 = vector.load %arg7[%c1_256, %c5_257, %c1_258] : memref<2x22x22xf32, #tpu.memory_space<vmem>>, vector<1x16x16xf32>
      %477 = vector.shape_cast %476 : vector<1x16x16xf32> to vector<16x16xf32>
      %478 = vector.broadcast %475 : f32 to vector<16x16xf32>
      %479 = arith.mulf %478, %477 : vector<16x16xf32>
      %480 = arith.addf %474, %479 : vector<16x16xf32>
      %481 = arith.addf %469, %480 : vector<16x16xf32>
      %c37 = arith.constant 37 : index
      %482 = memref.load %arg2[%c37] : memref<99xf32, #tpu.memory_space<smem>>
      %c0_259 = arith.constant 0 : index
      %c5_260 = arith.constant 5 : index
      %c2_261 = arith.constant 2 : index
      %483 = vector.load %arg7[%c0_259, %c5_260, %c2_261] : memref<2x22x22xf32, #tpu.memory_space<vmem>>, vector<1x16x16xf32>
      %484 = vector.shape_cast %483 : vector<1x16x16xf32> to vector<16x16xf32>
      %485 = vector.broadcast %482 : f32 to vector<16x16xf32>
      %486 = arith.mulf %485, %484 : vector<16x16xf32>
      %c86 = arith.constant 86 : index
      %487 = memref.load %arg2[%c86] : memref<99xf32, #tpu.memory_space<smem>>
      %c1_262 = arith.constant 1 : index
      %c5_263 = arith.constant 5 : index
      %c2_264 = arith.constant 2 : index
      %488 = vector.load %arg7[%c1_262, %c5_263, %c2_264] : memref<2x22x22xf32, #tpu.memory_space<vmem>>, vector<1x16x16xf32>
      %489 = vector.shape_cast %488 : vector<1x16x16xf32> to vector<16x16xf32>
      %490 = vector.broadcast %487 : f32 to vector<16x16xf32>
      %491 = arith.mulf %490, %489 : vector<16x16xf32>
      %492 = arith.addf %486, %491 : vector<16x16xf32>
      %493 = arith.addf %481, %492 : vector<16x16xf32>
      %c38 = arith.constant 38 : index
      %494 = memref.load %arg2[%c38] : memref<99xf32, #tpu.memory_space<smem>>
      %c0_265 = arith.constant 0 : index
      %c5_266 = arith.constant 5 : index
      %c3_267 = arith.constant 3 : index
      %495 = vector.load %arg7[%c0_265, %c5_266, %c3_267] : memref<2x22x22xf32, #tpu.memory_space<vmem>>, vector<1x16x16xf32>
      %496 = vector.shape_cast %495 : vector<1x16x16xf32> to vector<16x16xf32>
      %497 = vector.broadcast %494 : f32 to vector<16x16xf32>
      %498 = arith.mulf %497, %496 : vector<16x16xf32>
      %c87 = arith.constant 87 : index
      %499 = memref.load %arg2[%c87] : memref<99xf32, #tpu.memory_space<smem>>
      %c1_268 = arith.constant 1 : index
      %c5_269 = arith.constant 5 : index
      %c3_270 = arith.constant 3 : index
      %500 = vector.load %arg7[%c1_268, %c5_269, %c3_270] : memref<2x22x22xf32, #tpu.memory_space<vmem>>, vector<1x16x16xf32>
      %501 = vector.shape_cast %500 : vector<1x16x16xf32> to vector<16x16xf32>
      %502 = vector.broadcast %499 : f32 to vector<16x16xf32>
      %503 = arith.mulf %502, %501 : vector<16x16xf32>
      %504 = arith.addf %498, %503 : vector<16x16xf32>
      %505 = arith.addf %493, %504 : vector<16x16xf32>
      %c39 = arith.constant 39 : index
      %506 = memref.load %arg2[%c39] : memref<99xf32, #tpu.memory_space<smem>>
      %c0_271 = arith.constant 0 : index
      %c5_272 = arith.constant 5 : index
      %c4_273 = arith.constant 4 : index
      %507 = vector.load %arg7[%c0_271, %c5_272, %c4_273] : memref<2x22x22xf32, #tpu.memory_space<vmem>>, vector<1x16x16xf32>
      %508 = vector.shape_cast %507 : vector<1x16x16xf32> to vector<16x16xf32>
      %509 = vector.broadcast %506 : f32 to vector<16x16xf32>
      %510 = arith.mulf %509, %508 : vector<16x16xf32>
      %c88 = arith.constant 88 : index
      %511 = memref.load %arg2[%c88] : memref<99xf32, #tpu.memory_space<smem>>
      %c1_274 = arith.constant 1 : index
      %c5_275 = arith.constant 5 : index
      %c4_276 = arith.constant 4 : index
      %512 = vector.load %arg7[%c1_274, %c5_275, %c4_276] : memref<2x22x22xf32, #tpu.memory_space<vmem>>, vector<1x16x16xf32>
      %513 = vector.shape_cast %512 : vector<1x16x16xf32> to vector<16x16xf32>
      %514 = vector.broadcast %511 : f32 to vector<16x16xf32>
      %515 = arith.mulf %514, %513 : vector<16x16xf32>
      %516 = arith.addf %510, %515 : vector<16x16xf32>
      %517 = arith.addf %505, %516 : vector<16x16xf32>
      %c40 = arith.constant 40 : index
      %518 = memref.load %arg2[%c40] : memref<99xf32, #tpu.memory_space<smem>>
      %c0_277 = arith.constant 0 : index
      %c5_278 = arith.constant 5 : index
      %c5_279 = arith.constant 5 : index
      %519 = vector.load %arg7[%c0_277, %c5_278, %c5_279] : memref<2x22x22xf32, #tpu.memory_space<vmem>>, vector<1x16x16xf32>
      %520 = vector.shape_cast %519 : vector<1x16x16xf32> to vector<16x16xf32>
      %521 = vector.broadcast %518 : f32 to vector<16x16xf32>
      %522 = arith.mulf %521, %520 : vector<16x16xf32>
      %c89 = arith.constant 89 : index
      %523 = memref.load %arg2[%c89] : memref<99xf32, #tpu.memory_space<smem>>
      %c1_280 = arith.constant 1 : index
      %c5_281 = arith.constant 5 : index
      %c5_282 = arith.constant 5 : index
      %524 = vector.load %arg7[%c1_280, %c5_281, %c5_282] : memref<2x22x22xf32, #tpu.memory_space<vmem>>, vector<1x16x16xf32>
      %525 = vector.shape_cast %524 : vector<1x16x16xf32> to vector<16x16xf32>
      %526 = vector.broadcast %523 : f32 to vector<16x16xf32>
      %527 = arith.mulf %526, %525 : vector<16x16xf32>
      %528 = arith.addf %522, %527 : vector<16x16xf32>
      %529 = arith.addf %517, %528 : vector<16x16xf32>
      %c41 = arith.constant 41 : index
      %530 = memref.load %arg2[%c41] : memref<99xf32, #tpu.memory_space<smem>>
      %c0_283 = arith.constant 0 : index
      %c5_284 = arith.constant 5 : index
      %c6_285 = arith.constant 6 : index
      %531 = vector.load %arg7[%c0_283, %c5_284, %c6_285] : memref<2x22x22xf32, #tpu.memory_space<vmem>>, vector<1x16x16xf32>
      %532 = vector.shape_cast %531 : vector<1x16x16xf32> to vector<16x16xf32>
      %533 = vector.broadcast %530 : f32 to vector<16x16xf32>
      %534 = arith.mulf %533, %532 : vector<16x16xf32>
      %c90 = arith.constant 90 : index
      %535 = memref.load %arg2[%c90] : memref<99xf32, #tpu.memory_space<smem>>
      %c1_286 = arith.constant 1 : index
      %c5_287 = arith.constant 5 : index
      %c6_288 = arith.constant 6 : index
      %536 = vector.load %arg7[%c1_286, %c5_287, %c6_288] : memref<2x22x22xf32, #tpu.memory_space<vmem>>, vector<1x16x16xf32>
      %537 = vector.shape_cast %536 : vector<1x16x16xf32> to vector<16x16xf32>
      %538 = vector.broadcast %535 : f32 to vector<16x16xf32>
      %539 = arith.mulf %538, %537 : vector<16x16xf32>
      %540 = arith.addf %534, %539 : vector<16x16xf32>
      %541 = arith.addf %529, %540 : vector<16x16xf32>
      %c42 = arith.constant 42 : index
      %542 = memref.load %arg2[%c42] : memref<99xf32, #tpu.memory_space<smem>>
      %c0_289 = arith.constant 0 : index
      %c6_290 = arith.constant 6 : index
      %c0_291 = arith.constant 0 : index
      %543 = vector.load %arg7[%c0_289, %c6_290, %c0_291] : memref<2x22x22xf32, #tpu.memory_space<vmem>>, vector<1x16x16xf32>
      %544 = vector.shape_cast %543 : vector<1x16x16xf32> to vector<16x16xf32>
      %545 = vector.broadcast %542 : f32 to vector<16x16xf32>
      %546 = arith.mulf %545, %544 : vector<16x16xf32>
      %c91 = arith.constant 91 : index
      %547 = memref.load %arg2[%c91] : memref<99xf32, #tpu.memory_space<smem>>
      %c1_292 = arith.constant 1 : index
      %c6_293 = arith.constant 6 : index
      %c0_294 = arith.constant 0 : index
      %548 = vector.load %arg7[%c1_292, %c6_293, %c0_294] : memref<2x22x22xf32, #tpu.memory_space<vmem>>, vector<1x16x16xf32>
      %549 = vector.shape_cast %548 : vector<1x16x16xf32> to vector<16x16xf32>
      %550 = vector.broadcast %547 : f32 to vector<16x16xf32>
      %551 = arith.mulf %550, %549 : vector<16x16xf32>
      %552 = arith.addf %546, %551 : vector<16x16xf32>
      %553 = arith.addf %541, %552 : vector<16x16xf32>
      %c43 = arith.constant 43 : index
      %554 = memref.load %arg2[%c43] : memref<99xf32, #tpu.memory_space<smem>>
      %c0_295 = arith.constant 0 : index
      %c6_296 = arith.constant 6 : index
      %c1_297 = arith.constant 1 : index
      %555 = vector.load %arg7[%c0_295, %c6_296, %c1_297] : memref<2x22x22xf32, #tpu.memory_space<vmem>>, vector<1x16x16xf32>
      %556 = vector.shape_cast %555 : vector<1x16x16xf32> to vector<16x16xf32>
      %557 = vector.broadcast %554 : f32 to vector<16x16xf32>
      %558 = arith.mulf %557, %556 : vector<16x16xf32>
      %c92 = arith.constant 92 : index
      %559 = memref.load %arg2[%c92] : memref<99xf32, #tpu.memory_space<smem>>
      %c1_298 = arith.constant 1 : index
      %c6_299 = arith.constant 6 : index
      %c1_300 = arith.constant 1 : index
      %560 = vector.load %arg7[%c1_298, %c6_299, %c1_300] : memref<2x22x22xf32, #tpu.memory_space<vmem>>, vector<1x16x16xf32>
      %561 = vector.shape_cast %560 : vector<1x16x16xf32> to vector<16x16xf32>
      %562 = vector.broadcast %559 : f32 to vector<16x16xf32>
      %563 = arith.mulf %562, %561 : vector<16x16xf32>
      %564 = arith.addf %558, %563 : vector<16x16xf32>
      %565 = arith.addf %553, %564 : vector<16x16xf32>
      %c44 = arith.constant 44 : index
      %566 = memref.load %arg2[%c44] : memref<99xf32, #tpu.memory_space<smem>>
      %c0_301 = arith.constant 0 : index
      %c6_302 = arith.constant 6 : index
      %c2_303 = arith.constant 2 : index
      %567 = vector.load %arg7[%c0_301, %c6_302, %c2_303] : memref<2x22x22xf32, #tpu.memory_space<vmem>>, vector<1x16x16xf32>
      %568 = vector.shape_cast %567 : vector<1x16x16xf32> to vector<16x16xf32>
      %569 = vector.broadcast %566 : f32 to vector<16x16xf32>
      %570 = arith.mulf %569, %568 : vector<16x16xf32>
      %c93 = arith.constant 93 : index
      %571 = memref.load %arg2[%c93] : memref<99xf32, #tpu.memory_space<smem>>
      %c1_304 = arith.constant 1 : index
      %c6_305 = arith.constant 6 : index
      %c2_306 = arith.constant 2 : index
      %572 = vector.load %arg7[%c1_304, %c6_305, %c2_306] : memref<2x22x22xf32, #tpu.memory_space<vmem>>, vector<1x16x16xf32>
      %573 = vector.shape_cast %572 : vector<1x16x16xf32> to vector<16x16xf32>
      %574 = vector.broadcast %571 : f32 to vector<16x16xf32>
      %575 = arith.mulf %574, %573 : vector<16x16xf32>
      %576 = arith.addf %570, %575 : vector<16x16xf32>
      %577 = arith.addf %565, %576 : vector<16x16xf32>
      %c45 = arith.constant 45 : index
      %578 = memref.load %arg2[%c45] : memref<99xf32, #tpu.memory_space<smem>>
      %c0_307 = arith.constant 0 : index
      %c6_308 = arith.constant 6 : index
      %c3_309 = arith.constant 3 : index
      %579 = vector.load %arg7[%c0_307, %c6_308, %c3_309] : memref<2x22x22xf32, #tpu.memory_space<vmem>>, vector<1x16x16xf32>
      %580 = vector.shape_cast %579 : vector<1x16x16xf32> to vector<16x16xf32>
      %581 = vector.broadcast %578 : f32 to vector<16x16xf32>
      %582 = arith.mulf %581, %580 : vector<16x16xf32>
      %c94 = arith.constant 94 : index
      %583 = memref.load %arg2[%c94] : memref<99xf32, #tpu.memory_space<smem>>
      %c1_310 = arith.constant 1 : index
      %c6_311 = arith.constant 6 : index
      %c3_312 = arith.constant 3 : index
      %584 = vector.load %arg7[%c1_310, %c6_311, %c3_312] : memref<2x22x22xf32, #tpu.memory_space<vmem>>, vector<1x16x16xf32>
      %585 = vector.shape_cast %584 : vector<1x16x16xf32> to vector<16x16xf32>
      %586 = vector.broadcast %583 : f32 to vector<16x16xf32>
      %587 = arith.mulf %586, %585 : vector<16x16xf32>
      %588 = arith.addf %582, %587 : vector<16x16xf32>
      %589 = arith.addf %577, %588 : vector<16x16xf32>
      %c46 = arith.constant 46 : index
      %590 = memref.load %arg2[%c46] : memref<99xf32, #tpu.memory_space<smem>>
      %c0_313 = arith.constant 0 : index
      %c6_314 = arith.constant 6 : index
      %c4_315 = arith.constant 4 : index
      %591 = vector.load %arg7[%c0_313, %c6_314, %c4_315] : memref<2x22x22xf32, #tpu.memory_space<vmem>>, vector<1x16x16xf32>
      %592 = vector.shape_cast %591 : vector<1x16x16xf32> to vector<16x16xf32>
      %593 = vector.broadcast %590 : f32 to vector<16x16xf32>
      %594 = arith.mulf %593, %592 : vector<16x16xf32>
      %c95 = arith.constant 95 : index
      %595 = memref.load %arg2[%c95] : memref<99xf32, #tpu.memory_space<smem>>
      %c1_316 = arith.constant 1 : index
      %c6_317 = arith.constant 6 : index
      %c4_318 = arith.constant 4 : index
      %596 = vector.load %arg7[%c1_316, %c6_317, %c4_318] : memref<2x22x22xf32, #tpu.memory_space<vmem>>, vector<1x16x16xf32>
      %597 = vector.shape_cast %596 : vector<1x16x16xf32> to vector<16x16xf32>
      %598 = vector.broadcast %595 : f32 to vector<16x16xf32>
      %599 = arith.mulf %598, %597 : vector<16x16xf32>
      %600 = arith.addf %594, %599 : vector<16x16xf32>
      %601 = arith.addf %589, %600 : vector<16x16xf32>
      %c47 = arith.constant 47 : index
      %602 = memref.load %arg2[%c47] : memref<99xf32, #tpu.memory_space<smem>>
      %c0_319 = arith.constant 0 : index
      %c6_320 = arith.constant 6 : index
      %c5_321 = arith.constant 5 : index
      %603 = vector.load %arg7[%c0_319, %c6_320, %c5_321] : memref<2x22x22xf32, #tpu.memory_space<vmem>>, vector<1x16x16xf32>
      %604 = vector.shape_cast %603 : vector<1x16x16xf32> to vector<16x16xf32>
      %605 = vector.broadcast %602 : f32 to vector<16x16xf32>
      %606 = arith.mulf %605, %604 : vector<16x16xf32>
      %c96 = arith.constant 96 : index
      %607 = memref.load %arg2[%c96] : memref<99xf32, #tpu.memory_space<smem>>
      %c1_322 = arith.constant 1 : index
      %c6_323 = arith.constant 6 : index
      %c5_324 = arith.constant 5 : index
      %608 = vector.load %arg7[%c1_322, %c6_323, %c5_324] : memref<2x22x22xf32, #tpu.memory_space<vmem>>, vector<1x16x16xf32>
      %609 = vector.shape_cast %608 : vector<1x16x16xf32> to vector<16x16xf32>
      %610 = vector.broadcast %607 : f32 to vector<16x16xf32>
      %611 = arith.mulf %610, %609 : vector<16x16xf32>
      %612 = arith.addf %606, %611 : vector<16x16xf32>
      %613 = arith.addf %601, %612 : vector<16x16xf32>
      %c48 = arith.constant 48 : index
      %614 = memref.load %arg2[%c48] : memref<99xf32, #tpu.memory_space<smem>>
      %c0_325 = arith.constant 0 : index
      %c6_326 = arith.constant 6 : index
      %c6_327 = arith.constant 6 : index
      %615 = vector.load %arg7[%c0_325, %c6_326, %c6_327] : memref<2x22x22xf32, #tpu.memory_space<vmem>>, vector<1x16x16xf32>
      %616 = vector.shape_cast %615 : vector<1x16x16xf32> to vector<16x16xf32>
      %617 = vector.broadcast %614 : f32 to vector<16x16xf32>
      %618 = arith.mulf %617, %616 : vector<16x16xf32>
      %c97 = arith.constant 97 : index
      %619 = memref.load %arg2[%c97] : memref<99xf32, #tpu.memory_space<smem>>
      %c1_328 = arith.constant 1 : index
      %c6_329 = arith.constant 6 : index
      %c6_330 = arith.constant 6 : index
      %620 = vector.load %arg7[%c1_328, %c6_329, %c6_330] : memref<2x22x22xf32, #tpu.memory_space<vmem>>, vector<1x16x16xf32>
      %621 = vector.shape_cast %620 : vector<1x16x16xf32> to vector<16x16xf32>
      %622 = vector.broadcast %619 : f32 to vector<16x16xf32>
      %623 = arith.mulf %622, %621 : vector<16x16xf32>
      %624 = arith.addf %618, %623 : vector<16x16xf32>
      %625 = arith.addf %613, %624 : vector<16x16xf32>
      %626 = arith.negf %625 : vector<16x16xf32>
      %627 = math.exp %626 : vector<16x16xf32>
      %cst_331 = arith.constant 1.000000e+00 : f32
      %628 = vector.broadcast %cst_331 : f32 to vector<16x16xf32>
      %629 = arith.addf %628, %627 : vector<16x16xf32>
      %630 = arith.divf %628, %629 : vector<16x16xf32>
      %c0_332 = arith.constant 0 : index
      %c0_333 = arith.constant 0 : index
      %c0_334 = arith.constant 0 : index
      %c0_335 = arith.constant 0 : index
      %631 = vector.load %arg4[%c0_332, %c0_333, %c0_334, %c0_335] : memref<1x1x16x16xf32, #tpu.memory_space<vmem>>, vector<1x1x16x16xf32>
      %632 = vector.shape_cast %631 : vector<1x1x16x16xf32> to vector<16x16xf32>
      %633 = vector.shape_cast %630 : vector<16x16xf32> to vector<1x1x16x16xf32>
      tpu.vector_store %arg4[%c0_332, %c0_333, %c0_334, %c0_335], %633 {strides = array<i32>} : memref<1x1x16x16xf32, #tpu.memory_space<vmem>>, vector<1x1x16x16xf32>,
    } else {
    }
    return
  }
  func.func @transform_0(%arg0: i32, %arg1: i32) -> i32 {
    %c0_i32 = arith.constant 0 : i32
    %c0_i32_0 = arith.constant 0 : i32
    return %c0_i32 : i32
  }
  func.func @transform_1(%arg0: i32, %arg1: i32) -> (i32, i32, i32, i32) {
    %c0_i32 = arith.constant 0 : i32
    %c0_i32_0 = arith.constant 0 : i32
    %c0_i32_1 = arith.constant 0 : i32
    return %arg0, %arg1, %c0_i32, %c0_i32_0 : i32, i32, i32, i32
  }
  func.func @transform_2(%arg0: i32, %arg1: i32) -> (i32, i32, i32, i32) {
    %c0_i32 = arith.constant 0 : i32
    %c0_i32_0 = arith.constant 0 : i32
    %c0_i32_1 = arith.constant 0 : i32
    %c0_i32_2 = arith.constant 0 : i32
    return %arg0, %c0_i32, %c0_i32_0, %c0_i32_1 : i32, i32, i32, i32
  }
}

</mosaic_0001>

<bundles_post_ra>
// kernel: tpu_custom_call.1
= control target key start
LH: loop header
LB: loop body
LE: loop exit
PB: predicated region body
PF: predicated region fallthrough
CT: control target
= control target key end

     0   :  { %7 = vsyncpa [#allocation8], 0  ;;  %s2594_s0 = inlined_call_operand.hbm [shape: f32[99], index: 0, kind: input, shape index: {}]   ;;  %s2595_s1 = inlined_call_operand.hbm [shape: f32[2,4,16,16], index: 1, kind: input, shape index: {}]   ;;  %s2596_s2 = inlined_call_operand.hbm [shape: f32[2,1,16,16], index: 2, kind: output, shape index: {}]  }
   0x1   :  { %8 = vsyncpa [#allocation6], 0 }
   0x2   :  { %10 = vsyncpa [#allocation6 + $0x1], 0 }
   0x3   :  { %11 = vsyncpa [#allocation7], 0 }
   0x4   :  { %13 = vsyncpa [#allocation7 + $0x1], 0  ;;  %s1763_s9 = smov 0   ;;  %s1765_s10 = smov 0  }
   0x5   :  { %s1767_s11 = smov 0   ;;  %s1769_s12 = smov 0  }
   0x6   :  { %s1771_s13 = smov 0   ;;  %s1773_s14 = smov 0  }
   0x7 LB: > { %s1382_s15 = sadd.s32 4294967295, %s1732_s14   ;;  %s1383_s16 = sadd.s32 4294967294, %s1732_s14   ;;  %s1732_s14 = sphi %s1773_s14, %s19_s14   ;;  %s1728_s13 = sphi %s1771_s13, %s2611_s13   ;;  %s1724_s12 = sphi %s1769_s12, %s2610_s12   ;;  %s1720_s11 = sphi %s1767_s11, %s2609_s11   ;;  %s1716_s10 = sphi %s1765_s10, %s2608_s10   ;;  %s1712_s9 = sphi %s1763_s9, %s2607_s9  }
   0x8   : > { %s61_s17 = sadd.s32 1, %s1720_s11  ;;  %p68_p0 = scmp.ne.s32.totalorder %s1720_s11, %s1716_s10 }
   0x9   : > { %p69_p1 = scmp.eq.s32.totalorder %s1732_s14, 0  ;;  %p74_p2 = scmp.ne.s32.totalorder %s1716_s10, %s1712_s9 }
   0xa   : > { %p1801_p3 = scmp.eq.s32.totalorder %s1382_s15, 0  ;;  %p98_p4 = scmp.eq.s32.totalorder %s1382_s15, 1 }
   0xb   : > { %p1805_p5 = por %p69_p1, %p68_p0  ;;  %p104_p6 = scmp.eq.s32.totalorder %s1383_s16, 1 }
   0xc   : > { %p1811_p7 = por %p1801_p3, %p74_p2  ;;  %p1815_p8 = por %p98_p4, %p68_p0 }
   0xd   : > { %p1819_p9 = por %p104_p6, %p74_p2  ;;  %p1384_p10 = scmp.ge.s32.totalorder %s1732_s14, 1 }
   0xe   : > { %p111_p11 = scmp.lt.s32.totalorder %s1732_s14, 3  ;;  %s123_s25 = sshll.u32 %s2594_s0, 4  ;;  %s124_s25 = int_to_ptr.hbm [resolvable:$true] %s123_s25 }
   0xf   : > { %p1386_p13 = scmp.ge.s32.totalorder %s1732_s14, 2  ;;  %p1528_p0 = scmp.lt.s32.totalorder %s1732_s14, 2 }
  0x10   : > { %p1828_p12 = pnand %p1384_p10, %p111_p11  ;;  %s31_s28 = sadd.s32 1, %s1728_s13 }
  0x11   : > { %p1838_p2 = pnand %p1528_p0, %p1805_p5  ;;  %p33_p6 = scmp.ge.s32.totalorder %s31_s28, 2 }
  0x12   : > { %p1515_p1 = pneg %p1828_p12  ;;  %s134_s29 = sand.u32 1, %s1720_s11  }
  0x13   : > { %s1734_s30 = smov [#allocation5]   ;;  %s2613_s28 = smov (%p33_p6, %s31_s28), 0 }
  0x14   : > { %p1516_p4 = pnand %p1515_p1, %p1801_p3  ;;  %s1387_s3 = sshll.u32 %s134_s29, 6 }
  0x15   : > { %s56_s4 = ssub.s32 %s1728_s13, %s2613_s28  ;;  %s1505_s5 = sshll.u32 %s1728_s13, 6 }
  0x16   : > { %1518 = dma.hbm_to_smem (!%p1516_p4), %s124_s25, 16, %s1734_s30, [#allocation8]  }
  0x17   : > { %p59_p10 = scmp.eq.s32.totalorder %s56_s4, 0  ;;  %s146_s8 = scalar_lea.hbm %s2595_s1, %s1505_s5 }
  0x18   : > { %s138_s15 = scalar_lea.vmem [#allocation9], %s1387_s3  ;;  %s147_s23 = sshll.u32 %s146_s8, 4  ;;  %s148_s23 = int_to_ptr.hbm [resolvable:$true] %s147_s23 }
  0x19   : > { %s149_s16 = sshll.u32 %s138_s15, 4  ;;  %s135_s24 = scalar_lea.sflag [#allocation6], %s134_s29  ;;  %s150_s16 = int_to_ptr.vmem [resolvable:$true] %s149_s16 }
  0x1a   : > { %s1857_s19 = scalar_select %p59_p10, %s1720_s11, %s61_s17  }
  0x1b   : > { %s1735_s25 = smov 128   ;;  %s1736_s30 = smov 8  }
  0x1c   : > { %1522 = dma.hbm_to_vmem [thread:$0]  (!%p1838_p2), %s148_s23, 1024, %s150_s16, %s135_s24, %s1735_s25, %s1735_s25, %s1736_s30  }
  0x1d   : > { %161 = sbr.rel (%p1828_p12) target bundleno = 556 (0x22c), region = 28 }
  0x22   : > { %1699 = dma.done.wait (%p1801_p3), [#allocation8], 16  }
  0x23   : > { %1701 = vsyncadd (%p1801_p3), [#allocation8], 4294967280  ;;  %s1868_s17 = sand.u32 1, %s1716_s10  }
  0x24   : > { %s1392_s29 = sshll.u32 %s1868_s17, 6  ;;  %s169_s3 = scalar_lea.sflag [#allocation6], %s1868_s17 }
  0x25   : > { %s1872_s4 = scalar_lea.vmem [#allocation9], %s1392_s29 }
  0x26   : > { %1703 = dma.done.wait (%p1811_p7), %s169_s3, 1024  }
  0x27   : > { %1705 = vsyncadd (%p1811_p7), %s169_s3, 4294966272 }
  0x28   : > { %178 = sfence }
  0x29   : > { %vm200_vm0 = vcmask 130048   ;;  %v1737_v0 = vmov -inf   ;;  %vm246_vm1 = vcmask 179200   ;;  %v1738_v1 = vmov 0.0   ;;  %v209_v2 = vld [vmem:[%s1872_s4] sm:$0xff]  ;;  %v210_v3 = vld [vmem:[%s1872_s4 + $0x8] sm:$0xff] }
  0x2a   : > { %203 = vst.msk [vmem:[#allocation3] sm:$0xff] %vm200_vm0, %v1737_v0  ;;  %v1394_v5 = vld [vmem:[%s1872_s4 + $0x10] sm:$0xff]  ;;  %v1395_v8 = vld [vmem:[%s1872_s4 + $0x18] sm:$0xff]  ;;  %v1396_v9 = vld [vmem:[%s1872_s4 + $0x20] sm:$0xff]  ;;  %s1739_s18 = smov 3   ;;  %vm249_vm2 = vcmask 177152  }
  0x2b   : > { %204 = vst.msk [vmem:[#allocation3 + $0x8] sm:$0xff] %vm200_vm0, %v1737_v0  ;;  %v1397_v14 = vld [vmem:[%s1872_s4 + $0x28] sm:$0xff]  ;;  %v1398_v16 = vld [vmem:[%s1872_s4 + $0x30] sm:$0xff]  ;;  %v1399_v21 = vld [vmem:[%s1872_s4 + $0x38] sm:$0xff]  ;;  %vm262_vm3 = vcmask 154648   ;;  %s1894_s20 = sld [smem:[#allocation5 + $0x33]] }
  0x2c   : > { %201 = vst.msk [vmem:[#allocation2] sm:$0xff] %vm200_vm0, %v1738_v1  ;;  %s1896_s26 = sld [smem:[#allocation5 + $0x32]]  ;;  %s1740_s24 = smov 126  }
  0x2d   : > { %202 = vst.msk [vmem:[#allocation2 + $0x8] sm:$0xff] %vm200_vm0, %v1738_v1  ;;  %s1899_s27 = sld [smem:[#allocation5 + $0x2]]  ;;  %s2597_s25 = smov 127  }
  0x2e   : > { %251 = vst.msk [vmem:[#allocation4 + $0x18] sm:$0xff] %vm246_vm1, %v1738_v1  ;;  %s1901_s5 = sld [smem:[#allocation5 + $0x1]]  ;;  %s1742_s3 = smov 125  }
  0x2f   : > { %252 = vst.msk [vmem:[#allocation4 + $0x20] sm:$0xff] %vm246_vm1, %v1738_v1  ;;  %s1911_s6 = sld [smem:[#allocation5 + $0x3]] }
  0x30   : > { %247 = vst.msk [vmem:[#allocation4] sm:$0xff] %vm246_vm1, %v1738_v1  ;;  %s1915_s7 = sld [smem:[#allocation5 + $0x34]] }
  0x31   : > { %v207_v4 = vld [vmem:[#allocation3] sm:$0xff]  ;;  %248 = vst.msk [vmem:[#allocation4 + $0x8] sm:$0xff] %vm246_vm1, %v1738_v1  ;;  %v319_v36 = vstv %s1894_s20  ;;  %s1919_s8 = sld [smem:[#allocation5 + $0x5]] }
  0x32   : > { %v213_v6 = vmax.f32 %v207_v4, %v209_v2  ;;  %v208_v7 = vld [vmem:[#allocation3 + $0x8] sm:$0xff]  ;;  %253 = vst.msk [vmem:[#allocation4 + $0x28] sm:$0x3f] %vm249_vm2, %v1738_v1  ;;  %v299_v37 = vstv %s1896_s26  ;;  %s1924_s15 = sld [smem:[#allocation5 + $0x36]] }
  0x33   : > { %v205_v10 = vld [vmem:[#allocation2] sm:$0xff]  ;;  %v214_v11 = vmax.f32 %v208_v7, %v210_v3  ;;  %250 = vst.msk [vmem:[#allocation4 + $0x10] sm:$0x3f] %vm249_vm2, %v1738_v1  ;;  %v315_v38 = vstv %s1899_s27  ;;  %s1926_s16 = sld [smem:[#allocation5 + $0x4]] }
  0x34   : > { %v220_v12 = vmax.f32 %v213_v6, %v1394_v5  ;;  %v211_v13 = vadd.f32 %v209_v2, %v205_v10  ;;  %v206_v15 = vld [vmem:[#allocation2 + $0x8] sm:$0xff]  ;;  %v295_v39 = vstv %s1901_s5  ;;  %s1928_s23 = sld [smem:[#allocation5 + $0x35]] }
  0x35   : > { %v221_v17 = vmax.f32 %v214_v11, %v1395_v8  ;;  %v212_v18 = vadd.f32 %v210_v3, %v206_v15  ;;  %v335_v52 = vstv %s1911_s6  ;;  %s1934_s30 = sld [smem:[#allocation5]]  ;;  %s1743_s6 = smov 123  }
  0x36   : > { %v227_v19 = vmax.f32 %v220_v12, %v1396_v9  ;;  %v218_v20 = vadd.f32 %v1394_v5, %v211_v13  ;;  %v339_v49 = vstv %s1915_s7  ;;  %s1940_s29 = sld [smem:[#allocation5 + $0x31]]  ;;  %s1744_s7 = smov 124  }
  0x37   : > { %v228_v22 = vmax.f32 %v221_v17, %v1397_v14  ;;  %v219_v23 = vadd.f32 %v1395_v8, %v212_v18  ;;  %v375_v61 = vstv %s1919_s8  ;;  %s1945_s4 = sld [smem:[#allocation5 + $0x6]]  ;;  %s1745_s8 = smov 122  }
  0x38   : > { %v234_v24 = vmax.f32 %v227_v19, %v1398_v16  ;;  %v225_v25 = vadd.f32 %v1396_v9, %v218_v20  ;;  %v379_v62 = vstv %s1924_s15  ;;  %s1955_s20 = sld [smem:[#allocation5 + $0x9]] }
  0x39   : > { %v235_v26 = vmax.f32 %v228_v22, %v1399_v21  ;;  %v226_v27 = vadd.f32 %v1397_v14, %v219_v23  ;;  %v355_v63 = vstv %s1926_s16  ;;  %s1957_s26 = sld [smem:[#allocation5 + $0x3a]] }
  0x3a   : > { %267 = vrot.lane.b32.xlu1 %v234_v24, %s1739_s18  ;;  %239 = vst.msk [vmem:[#allocation3] sm:$0xff] %vm200_vm0, %v234_v24  ;;  %v232_v28 = vadd.f32 %v1398_v16, %v225_v25  ;;  %v359_v0 = vstv %s1928_s23  ;;  %s1959_s27 = sld [smem:[#allocation5 + $0x8]] }
  0x3b   : > { %240 = vst.msk [vmem:[#allocation3 + $0x8] sm:$0xff] %vm200_vm0, %v235_v26  ;;  %v233_v29 = vadd.f32 %v1399_v21, %v226_v27  ;;  %s1961_s5 = sld [smem:[#allocation5 + $0x39]]  ;;  %v281_v10 = vstv %s1934_s30 }
  0x3c   : > { %v244_v30 = vmul.f32 0.25, %v232_v28  ;;  %237 = vst.msk [vmem:[#allocation2] sm:$0xff] %vm200_vm0, %v232_v28  ;;  %v287_v11 = vstv %s1940_s29  ;;  %s1986_s15 = sld [smem:[#allocation5 + $0xa]] }
  0x3d   : > { %238 = vst.msk [vmem:[#allocation2 + $0x8] sm:$0xff] %vm200_vm0, %v233_v29  ;;  %v245_v31 = vmul.f32 0.25, %v233_v29  ;;  %v395_v12 = vstv %s1945_s4  ;;  %s1989_s16 = sld [smem:[#allocation5 + $0x3b]] }
  0x3e   : > { %256 = vrot.lane.b32.xlu0 %v244_v30, %s1739_s18  ;;  %v451_v27 = vstv %s1955_s20  ;;  %s1995_s23 = sld [smem:[#allocation5 + $0xc]] }
  0x3f   : > { %v455_v28 = vstv %s1957_s26  ;;  %s1999_s30 = sld [smem:[#allocation5 + $0x7]] }
  0x40   : > { %s2001_s29 = sld [smem:[#allocation5 + $0x38]] }
  0x41   : > { %s2003_s4 = sld [smem:[#allocation5 + $0x3d]] }
  0x42   : > { %269 = vrot.lane.b32.xlu1 %v235_v26, %s1739_s18  ;;  %s2007_s20 = sld [smem:[#allocation5 + $0x3c]] }
  0x43   : > { %s2024_s26 = sld [smem:[#allocation5 + $0xd]] }
  0x46   : > { %258 = vrot.lane.b32.xlu0 %v245_v31, %s1739_s18  ;;  %s1951_s18 = sld [smem:[#allocation5 + $0x37]] }
  0x4c   : > { %v399_v17 = vstv %s1951_s18  ;;  %s2005_s18 = sld [smem:[#allocation5 + $0xb]] }
  0xac   : > { %v268_v32 = vpop.permute.xlu1 %267 }
  0xad   : > { %274 = vst.msk [vmem:[#allocation4 + $0x1b] sm:$0xff] %vm262_vm3, %v268_v32  ;;  %v431_v32 = vstv %s1959_s27  ;;  %s2029_s27 = sld [smem:[#allocation5 + $0xe]] }
  0xb0   : > { %v257_v33 = vpop.permute.xlu0 %256 }
  0xb1   : > { %263 = vst.msk [vmem:[#allocation4 + $0x3] sm:$0xff] %vm262_vm3, %v257_v33  ;;  %v435_v33 = vstv %s1961_s5  ;;  %s2035_s5 = sld [smem:[#allocation5 + $0x3f]] }
  0xb4   : > { %v270_v34 = vpop.permute.xlu1 %269  ;;  %v1904_v35 = vld [vmem:[#allocation4 + $0x18] sm:$0xff] }
  0xb5   : > { %275 = vst.msk [vmem:[#allocation4 + $0x23] sm:$0xff] %vm262_vm3, %v270_v34  ;;  %v320_v40 = vmul.f32 %v319_v36, %v1904_v35  ;;  %v300_v41 = vmul.f32 %v299_v37, %v1904_v35  ;;  %v380_v2 = vmul.f32 %v379_v62, %v1904_v35  ;;  %v360_v4 = vmul.f32 %v359_v0, %v1904_v35  ;;  %v1978_v31 = vld [vmem:[#allocation4 + $0x19] sm:$0xff] }
  0xb6   : > { %v340_v6 = vmul.f32 %v339_v49, %v1904_v35  ;;  %v288_v15 = vmul.f32 %v287_v11, %v1904_v35 }
  0xb8   : > { %v259_v42 = vpop.permute.xlu0 %258  ;;  %v1917_v43 = vld [vmem:[#allocation4] sm:$0xff] }
  0xb9   : > { %264 = vst.msk [vmem:[#allocation4 + $0xb] sm:$0xff] %vm262_vm3, %v259_v42  ;;  %v316_v44 = vmul.f32 %v315_v38, %v1917_v43  ;;  %v296_v45 = vmul.f32 %v295_v39, %v1917_v43  ;;  %v376_v1 = vmul.f32 %v375_v61, %v1917_v43  ;;  %v356_v3 = vmul.f32 %v355_v63, %v1917_v43  ;;  %v1976_v30 = vld [vmem:[#allocation4 + $0x1] sm:$0xff] }
  0xba   : > { %v336_v5 = vmul.f32 %v335_v52, %v1917_v43  ;;  %v282_v16 = vmul.f32 %v281_v10, %v1917_v43 }
  0xbb   : > { %v322_v46 = vadd.f32 %v320_v40, %v316_v44  ;;  %v302_v47 = vadd.f32 %v300_v41, %v296_v45  ;;  %v382_v7 = vadd.f32 %v380_v2, %v376_v1  ;;  %v362_v8 = vadd.f32 %v360_v4, %v356_v3 }
  0xbc   : > { %v286_v48 = vld [vmem:[#allocation4 + $0x20] sm:$0xff]  ;;  %v342_v9 = vadd.f32 %v340_v6, %v336_v5  ;;  %v1972_v21 = vadd.f32 %v288_v15, %v282_v16  ;;  %v396_v40 = vmul.f32 %v395_v12, %v1917_v43  ;;  %v400_v41 = vmul.f32 %v399_v17, %v1904_v35 }
  0xbd   : > { %326 = vrot.lane.b32.xlu0 %v322_v46, %s1740_s24  ;;  %306 = vrot.lane.b32.xlu2 %v302_v47, %s2597_s25  ;;  %v301_v50 = vmul.f32 %v299_v37, %v286_v48  ;;  %v341_v53 = vmul.f32 %v339_v49, %v286_v48  ;;  %v321_v57 = vmul.f32 %v319_v36, %v286_v48  ;;  %v422_v35 = vld [vmem:[#allocation4 + $0x21] sm:$0xff]  ;;  %v471_v43 = vstv %s1986_s15  ;;  %s2039_s15 = sld [smem:[#allocation5 + $0x3e]] }
  0xbe   : > { %v401_v19 = vmul.f32 %v399_v17, %v286_v48  ;;  %v381_v20 = vmul.f32 %v379_v62, %v286_v48  ;;  %v361_v22 = vmul.f32 %v359_v0, %v286_v48  ;;  %v289_v23 = vmul.f32 %v287_v11, %v286_v48  ;;  %v2055_v15 = vld [vmem:[#allocation4 + $0x22] sm:$0xff] }
  0xbf   : > { %v452_v36 = vmul.f32 %v451_v27, %v1976_v30  ;;  %v456_v37 = vmul.f32 %v455_v28, %v1978_v31  ;;  %v402_v45 = vadd.f32 %v400_v41, %v396_v40  ;;  %v475_v49 = vstv %s1989_s16  ;;  %s2043_s16 = sld [smem:[#allocation5 + $0x10]] }
  0xc0   : > { %v280_v51 = vld [vmem:[#allocation4 + $0x8] sm:$0xff]  ;;  %v495_v0 = vstv %s2007_s20  ;;  %v531_v16 = vstv %s2024_s26  ;;  %v553_v17 = vstv %s2029_s27  ;;  %s2084_s20 = sld [smem:[#allocation5 + $0x46]] }
  0xc1   : > { %v297_v54 = vmul.f32 %v295_v39, %v280_v51  ;;  %v337_v55 = vmul.f32 %v335_v52, %v280_v51  ;;  %v317_v56 = vmul.f32 %v315_v38, %v280_v51  ;;  %v397_v13 = vmul.f32 %v395_v12, %v280_v51  ;;  %v416_v46 = vld [vmem:[#allocation4 + $0x9] sm:$0xff]  ;;  %s2087_s26 = sld [smem:[#allocation5 + $0x42]] }
  0xc2   : > { %v377_v14 = vmul.f32 %v375_v61, %v280_v51  ;;  %v357_v18 = vmul.f32 %v355_v63, %v280_v51  ;;  %v283_v24 = vmul.f32 %v281_v10, %v280_v51  ;;  %v432_v38 = vmul.f32 %v431_v32, %v1976_v30  ;;  %s2093_s27 = sld [smem:[#allocation5 + $0x44]] }
  0xc3   : > { %v343_v58 = vadd.f32 %v341_v53, %v337_v55  ;;  %v323_v59 = vadd.f32 %v321_v57, %v317_v56  ;;  %v303_v60 = vadd.f32 %v301_v50, %v297_v54  ;;  %v403_v25 = vadd.f32 %v401_v19, %v397_v13 }
  0xc4   : > { %v383_v26 = vadd.f32 %v381_v20, %v377_v14  ;;  %v363_v29 = vadd.f32 %v361_v22, %v357_v18  ;;  %v1982_v34 = vadd.f32 %v289_v23, %v283_v24  ;;  %v436_v39 = vmul.f32 %v435_v33, %v1978_v31  ;;  %v2051_v14 = vld [vmem:[#allocation4 + $0xa] sm:$0xff] }
  0xc5   : > { %348 = vrot.lane.b32.xlu0 %v343_v58, %s1742_s3  ;;  %328 = vrot.lane.b32.xlu1 %v323_v59, %s1740_s24  ;;  %v458_v42 = vadd.f32 %v456_v37, %v452_v36  ;;  %v473_v47 = vmul.f32 %v471_v43, %v416_v46  ;;  %v453_v48 = vmul.f32 %v451_v27, %v416_v46  ;;  %v417_v51 = vstv %s1999_s30  ;;  %s2047_s30 = sld [smem:[#allocation5 + $0xf]] }
  0xc6   : > { %308 = vrot.lane.b32.xlu2 %v303_v60, %s2597_s25  ;;  %v438_v44 = vadd.f32 %v436_v39, %v432_v38  ;;  %v433_v50 = vmul.f32 %v431_v32, %v416_v46  ;;  %v477_v52 = vmul.f32 %v475_v49, %v422_v35  ;;  %v457_v53 = vmul.f32 %v455_v28, %v422_v35 }
  0xc7   : > { %v419_v54 = vmul.f32 %v417_v51, %v416_v46  ;;  %v423_v55 = vstv %s2001_s29  ;;  %v437_v56 = vmul.f32 %v435_v33, %v422_v35  ;;  %v511_v60 = vstv %s1995_s23  ;;  %s2045_s23 = sld [smem:[#allocation5 + $0x41]] }
  0xc8   : > { %v425_v57 = vmul.f32 %v423_v55, %v422_v35  ;;  %v479_v58 = vadd.f32 %v477_v52, %v473_v47  ;;  %v459_v59 = vadd.f32 %v457_v53, %v453_v48  ;;  %v515_v61 = vstv %s2003_s4  ;;  %s2049_s29 = sld [smem:[#allocation5 + $0x40]] }
  0xc9   : > { %v439_v62 = vadd.f32 %v437_v56, %v433_v50  ;;  %v491_v63 = vstv %s2005_s18  ;;  %v418_v2 = vmul.f32 %v417_v51, %v1976_v30  ;;  %v424_v3 = vmul.f32 %v423_v55, %v1978_v31  ;;  %s2071_s4 = sld [smem:[#allocation5 + $0x11]]  ;;  %v2103_v51 = vld [vmem:[#allocation4 + $0xb] sm:$0xff] }
  0xca   : > { %v2020_v1 = vadd.f32 %v425_v57, %v419_v54  ;;  %v512_v4 = vmul.f32 %v511_v60, %v1976_v30  ;;  %v516_v5 = vmul.f32 %v515_v61, %v1978_v31  ;;  %v492_v6 = vmul.f32 %v491_v63, %v1976_v30  ;;  %s2078_s18 = sld [smem:[#allocation5 + $0x15]]  ;;  %v2105_v54 = vld [vmem:[#allocation4 + $0x23] sm:$0xff] }
  0xcb   : > { %v2041_v10 = vadd.f32 %v424_v3, %v418_v2  ;;  %v533_v18 = vmul.f32 %v531_v16, %v416_v46  ;;  %v513_v19 = vmul.f32 %v511_v60, %v416_v46  ;;  %v555_v20 = vmul.f32 %v553_v17, %v2051_v14 }
  0xcc   : > { %v518_v11 = vadd.f32 %v516_v5, %v512_v4  ;;  %v559_v22 = vstv %s2035_s5  ;;  %v535_v23 = vstv %s2039_s15  ;;  %v493_v24 = vmul.f32 %v491_v63, %v416_v46  ;;  %s2097_s5 = sld [smem:[#allocation5 + $0x13]] }
  0xcd   : > { %386 = vrot.lane.b32.xlu0 %v382_v7, %s1743_s6  ;;  %366 = vrot.lane.b32.xlu1 %v362_v8, %s1744_s7  ;;  %v496_v7 = vmul.f32 %v495_v0, %v1978_v31  ;;  %v472_v8 = vmul.f32 %v471_v43, %v1976_v30  ;;  %v561_v27 = vmul.f32 %v559_v22, %v2055_v15  ;;  %v587_v33 = vstv %s2043_s16  ;;  %s2099_s15 = sld [smem:[#allocation5 + $0x12]] }
  0xce   : > { %346 = vrot.lane.b32.xlu2 %v342_v9, %s1742_s3  ;;  %v476_v9 = vmul.f32 %v475_v49, %v1978_v31  ;;  %v537_v28 = vmul.f32 %v535_v23, %v422_v35  ;;  %v497_v32 = vmul.f32 %v495_v0, %v422_v35  ;;  %v532_v49 = vmul.f32 %v531_v16, %v1976_v30  ;;  %s2101_s16 = sld [smem:[#allocation5 + $0x43]] }
  0xcf   : > { %v498_v12 = vadd.f32 %v496_v7, %v492_v6  ;;  %v2069_v36 = vadd.f32 %v561_v27, %v555_v20  ;;  %v536_v50 = vmul.f32 %v535_v23, %v1978_v31  ;;  %v695_v31 = vstv %s2084_s20  ;;  %s2147_s20 = sld [smem:[#allocation5 + $0x5b]]  ;;  %v2154_v20 = vld [vmem:[#allocation4 + $0x24] sm:$0xff]  ;;  %v2160_v27 = vld [vmem:[#allocation4 + $0x1c] sm:$0xff] }
  0xd0   : > { %v478_v13 = vadd.f32 %v476_v9, %v472_v8  ;;  %v539_v37 = vadd.f32 %v537_v28, %v533_v18  ;;  %v499_v41 = vadd.f32 %v497_v32, %v493_v24  ;;  %v689_v56 = vstv %s2078_s18  ;;  %s2139_s18 = sld [smem:[#allocation5 + $0x2a]]  ;;  %v2158_v24 = vld [vmem:[#allocation4 + $0x4] sm:$0xff] }
  0xd1   : > { %v538_v55 = vadd.f32 %v536_v50, %v532_v49  ;;  %v691_v30 = vmul.f32 %v689_v56, %v2103_v51  ;;  %v607_v57 = vstv %s2071_s4  ;;  %v697_v60 = vmul.f32 %v695_v31, %v2105_v54  ;;  %s2133_s4 = sld [smem:[#allocation5 + $0x54]]  ;;  %v2170_v32 = vld [vmem:[#allocation4 + $0x5] sm:$0xff] }
  0xd2   : > { %v651_v63 = vstv %s2093_s27  ;;  %v611_v0 = vstv %s2087_s26  ;;  %v647_v3 = vstv %s2097_s5  ;;  %s2179_s26 = sld [smem:[#allocation5 + $0x14]] }
  0xd3   : > { %v2131_v4 = vadd.f32 %v697_v60, %v691_v30  ;;  %v613_v5 = vmul.f32 %v611_v0, %v2055_v15  ;;  %s2259_s5 = sld [smem:[#allocation5 + $0x18]] }
  0xd4   : > { %s2263_s27 = sld [smem:[#allocation5 + $0x49]] }
  0xd5   : > { %408 = vrot.lane.b32.xlu0 %v403_v25, %s1745_s8  ;;  %388 = vrot.lane.b32.xlu1 %v383_v26, %s1743_s6  ;;  %v2063_v25 = vld [vmem:[#allocation4 + $0x2] sm:$0xff]  ;;  %v2065_v26 = vld [vmem:[#allocation4 + $0x1a] sm:$0xff] }
  0xd6   : > { %368 = vrot.lane.b32.xlu2 %v363_v29, %s1744_s7  ;;  %v517_v29 = vmul.f32 %v515_v61, %v422_v35  ;;  %v554_v39 = vmul.f32 %v553_v17, %v2063_v25  ;;  %v560_v40 = vmul.f32 %v559_v22, %v2065_v26  ;;  %v588_v35 = vmul.f32 %v587_v33, %v2063_v25 }
  0xd7   : > { %v609_v61 = vmul.f32 %v607_v57, %v2051_v14  ;;  %v648_v18 = vmul.f32 %v647_v3, %v2063_v25  ;;  %v967_v30 = vstv %s2133_s4  ;;  %s2219_s4 = sld [smem:[#allocation5 + $0x16]] }
  0xd8   : > { %v519_v38 = vadd.f32 %v517_v29, %v513_v19  ;;  %v2082_v46 = vadd.f32 %v560_v40, %v554_v39  ;;  %v2152_v19 = vld [vmem:[#allocation4 + $0xc] sm:$0xff]  ;;  %v608_v39 = vmul.f32 %v607_v57, %v2063_v25  ;;  %v612_v40 = vmul.f32 %v611_v0, %v2065_v26 }
  0xd9   : > { %v615_v16 = vadd.f32 %v613_v5, %v609_v61  ;;  %v1103_v5 = vstv %s2147_s20  ;;  %s2277_s20 = sld [smem:[#allocation5 + $0x4a]] }
  0xdd   : > { %462 = vrot.lane.b32.xlu0 %v458_v42, %s1740_s24  ;;  %442 = vrot.lane.b32.xlu1 %v438_v44, %s2597_s25  ;;  %v591_v42 = vstv %s2045_s23  ;;  %v567_v44 = vstv %s2047_s30  ;;  %s2108_s23 = sld [smem:[#allocation5 + $0x1c]] }
  0xde   : > { %406 = vrot.lane.b32.xlu2 %v402_v45, %s1745_s8  ;;  %v571_v45 = vstv %s2049_s29  ;;  %v592_v43 = vmul.f32 %v591_v42, %v2065_v26  ;;  %v568_v47 = vmul.f32 %v567_v44, %v2063_v25  ;;  %s2114_s30 = sld [smem:[#allocation5 + $0x4d]]  ;;  %v569_v2 = vmul.f32 %v567_v44, %v2051_v14 }
  0xdf   : > { %v572_v48 = vmul.f32 %v571_v45, %v2065_v26  ;;  %s2126_s29 = sld [smem:[#allocation5 + $0x23]]  ;;  %v593_v6 = vmul.f32 %v591_v42, %v2055_v15  ;;  %v573_v9 = vmul.f32 %v571_v45, %v2055_v15  ;;  %v2183_v42 = vld [vmem:[#allocation4 + $0x25] sm:$0xff] }
  0xe0   : > { %v594_v52 = vadd.f32 %v592_v43, %v588_v35  ;;  %v2189_v43 = vld [vmem:[#allocation4 + $0x6] sm:$0xff]  ;;  %v969_v60 = vmul.f32 %v967_v30, %v2183_v42 }
  0xe1   : > { %v574_v53 = vadd.f32 %v572_v48, %v568_v47  ;;  %v575_v23 = vadd.f32 %v573_v9, %v569_v2  ;;  %v2191_v47 = vld [vmem:[#allocation4 + $0xe] sm:$0xff] }
  0xe5   : > { %484 = vrot.lane.b32.xlu0 %v479_v58, %s1742_s3  ;;  %464 = vrot.lane.b32.xlu1 %v459_v59, %s1740_s24  ;;  %v2118_v58 = vld [vmem:[#allocation4 + $0x3] sm:$0xff]  ;;  %v2120_v59 = vld [vmem:[#allocation4 + $0x1b] sm:$0xff]  ;;  %v961_v50 = vstv %s2126_s29  ;;  %s2214_s29 = sld [smem:[#allocation5 + $0x48]] }
  0xe6   : > { %444 = vrot.lane.b32.xlu2 %v439_v62, %s2597_s25  ;;  %v589_v62 = vmul.f32 %v587_v33, %v2051_v14  ;;  %v690_v7 = vmul.f32 %v689_v56, %v2118_v58  ;;  %v696_v8 = vmul.f32 %v695_v31, %v2120_v59  ;;  %v2172_v33 = vld [vmem:[#allocation4 + $0xd] sm:$0xff]  ;;  %v962_v31 = vmul.f32 %v961_v50, %v2170_v32 }
  0xe7   : > { %v963_v56 = vmul.f32 %v961_v50, %v2172_v33 }
  0xe8   : > { %v595_v17 = vadd.f32 %v593_v6, %v589_v62  ;;  %v2156_v22 = vadd.f32 %v696_v8, %v690_v7  ;;  %v1097_v62 = vstv %s2139_s18  ;;  %s2227_s18 = sld [smem:[#allocation5 + $0x47]] }
  0xe9   : > { %v1099_v2 = vmul.f32 %v1097_v62, %v2191_v47  ;;  %v1098_v6 = vmul.f32 %v1097_v62, %v2189_v43  ;;  %v2221_v7 = vadd.f32 %v969_v60, %v963_v56 }
  0xeb   : > { %v727_v56 = vstv %s2214_s29  ;;  %s2308_s29 = sld [smem:[#allocation5 + $0x1e]] }
  0xed   : > { %522 = vrot.lane.b32.xlu0 %v518_v11, %s1743_s6  ;;  %502 = vrot.lane.b32.xlu1 %v498_v12, %s1744_s7  ;;  %v652_v11 = vmul.f32 %v651_v63, %v2065_v26  ;;  %v627_v12 = vstv %s2099_s15  ;;  %s2273_s15 = sld [smem:[#allocation5 + $0x4b]] }
  0xee   : > { %482 = vrot.lane.b32.xlu2 %v478_v13, %s1742_s3  ;;  %v631_v13 = vstv %s2101_s16  ;;  %v628_v28 = vmul.f32 %v627_v12, %v2063_v25  ;;  %s2275_s16 = sld [smem:[#allocation5 + $0x19]] }
  0xef   : > { %v632_v29 = vmul.f32 %v631_v13, %v2065_v26  ;;  %v654_v35 = vadd.f32 %v652_v11, %v648_v18 }
  0xf1   : > { %v634_v0 = vadd.f32 %v632_v29, %v628_v28  ;;  %v649_v29 = vmul.f32 %v647_v3, %v2051_v14  ;;  %v707_v3 = vstv %s2227_s18  ;;  %s2314_s18 = sld [smem:[#allocation5 + $0x4f]] }
  0xf5   : > { %544 = vrot.lane.b32.xlu0 %v539_v37, %s1745_s8  ;;  %524 = vrot.lane.b32.xlu1 %v519_v38, %s1743_s6  ;;  %v825_v37 = vstv %s2108_s23  ;;  %v831_v38 = vstv %s2114_s30  ;;  %s2187_s23 = sld [smem:[#allocation5 + $0x45]] }
  0xf6   : > { %504 = vrot.lane.b32.xlu2 %v499_v41, %s1744_s7  ;;  %v2181_v41 = vld [vmem:[#allocation4 + $0x1d] sm:$0xff]  ;;  %v827_v44 = vmul.f32 %v825_v37, %v2152_v19  ;;  %v833_v45 = vmul.f32 %v831_v38, %v2154_v20  ;;  %v826_v48 = vmul.f32 %v825_v37, %v2158_v24  ;;  %v832_v49 = vmul.f32 %v831_v38, %v2160_v27  ;;  %s2196_s30 = sld [smem:[#allocation5 + $0x62]] }
  0xf7   : > { %v968_v61 = vmul.f32 %v967_v30, %v2181_v41  ;;  %v629_v38 = vmul.f32 %v627_v12, %v2051_v14  ;;  %v703_v30 = vstv %s2219_s4  ;;  %v728_v12 = vmul.f32 %v727_v56, %v2120_v59  ;;  %s2310_s4 = sld [smem:[#allocation5 + $0x1d]] }
  0xf8   : > { %v2209_v57 = vadd.f32 %v832_v49, %v826_v48 }
  0xf9   : > { %v2223_v8 = vadd.f32 %v968_v61, %v962_v31  ;;  %v708_v31 = vmul.f32 %v707_v3, %v2120_v59 }
  0xfb   : > { %v671_v37 = vstv %s2187_s23  ;;  %s2297_s23 = sld [smem:[#allocation5 + $0x1b]] }
  0xfc   : > { %v277_v48 = vstv %s2196_s30  ;;  %v672_v62 = vmul.f32 %v671_v37, %v2065_v26  ;;  %v747_v26 = vstv %s2263_s27  ;;  %s2300_s30 = sld [smem:[#allocation5 + $0x4c]] }
  0xfd   : > { %598 = vrot.lane.b32.xlu0 %v594_v52, %s1740_s24  ;;  %578 = vrot.lane.b32.xlu1 %v574_v53, %s2597_s25  ;;  %v2198_v52 = vld [vmem:[#allocation4 + $0x1e] sm:$0xff]  ;;  %v2200_v53 = vld [vmem:[#allocation4 + $0x26] sm:$0xff]  ;;  %s2329_s27 = sld [smem:[#allocation5 + $0x1f]] }
  0xfe   : > { %542 = vrot.lane.b32.xlu2 %v538_v55, %s1745_s8  ;;  %v2202_v55 = vadd.f32 %v833_v45, %v827_v44  ;;  %v1105_v9 = vmul.f32 %v1103_v5, %v2200_v53  ;;  %v1104_v11 = vmul.f32 %v1103_v5, %v2198_v52  ;;  %v633_v44 = vmul.f32 %v631_v13, %v2055_v15 }
  0xff   : > { %v704_v13 = vmul.f32 %v703_v30, %v2118_v58  ;;  %v743_v5 = vstv %s2259_s5  ;;  %s2319_s5 = sld [smem:[#allocation5 + $0x4e]] }
 0x100   : > { %v2233_v18 = vadd.f32 %v1104_v11, %v1098_v6  ;;  %v635_v50 = vadd.f32 %v633_v44, %v629_v38  ;;  %v293_v6 = vadd.f32 %v1982_v34, %v277_v48 }
 0x105   : > { %620 = vrot.lane.b32.xlu0 %v615_v16, %s1742_s3  ;;  %600 = vrot.lane.b32.xlu1 %v595_v17, %s1740_s24  ;;  %v614_v16 = vadd.f32 %v612_v40, %v608_v39  ;;  %v2231_v17 = vadd.f32 %v1105_v9, %v1099_v2  ;;  %v673_v39 = vmul.f32 %v671_v37, %v2055_v15 }
 0x106   : > { %580 = vrot.lane.b32.xlu2 %v575_v23, %s2597_s25  ;;  %s2207_s25 = sld [smem:[#allocation5 + $0x17]]  ;;  %v667_v23 = vstv %s2179_s26  ;;  %v653_v40 = vmul.f32 %v651_v63, %v2055_v15  ;;  %s2606_s26 = smov 127   ;;  %v749_v9 = vmul.f32 %v747_v26, %v2105_v54 }
 0x107   : > { %v669_v28 = vmul.f32 %v667_v23, %v2051_v14  ;;  %v292_v14 = vadd.f32 %v1972_v21, %v277_v48  ;;  %v668_v61 = vmul.f32 %v667_v23, %v2063_v25  ;;  %v745_v25 = vmul.f32 %v743_v5, %v2103_v51 }
 0x109   : > { %v675_v45 = vadd.f32 %v673_v39, %v669_v28  ;;  %v674_v2 = vadd.f32 %v672_v62, %v668_v61  ;;  %v705_v28 = vmul.f32 %v703_v30, %v2103_v51  ;;  %v751_v38 = vadd.f32 %v749_v9, %v745_v25 }
 0x10c   : > { %v723_v49 = vstv %s2207_s25  ;;  %s2271_s25 = sld [smem:[#allocation5 + $0x1a]] }
 0x10d   : > { %658 = vrot.lane.b32.xlu0 %v654_v35, %s1743_s6  ;;  %638 = vrot.lane.b32.xlu1 %v634_v0, %s1744_s7  ;;  %v655_v35 = vadd.f32 %v653_v40, %v649_v29  ;;  %v724_v63 = vmul.f32 %v723_v49, %v2118_v58  ;;  %v710_v0 = vadd.f32 %v708_v31, %v704_v13  ;;  %v803_v13 = vstv %s2297_s23  ;;  %s2355_s23 = sld [smem:[#allocation5 + $0x51]] }
 0x10e   : > { %618 = vrot.lane.b32.xlu2 %v614_v16, %s1742_s3  ;;  %v725_v11 = vmul.f32 %v723_v49, %v2103_v51  ;;  %v729_v16 = vmul.f32 %v727_v56, %v2105_v54  ;;  %v709_v29 = vmul.f32 %v707_v3, %v2105_v54  ;;  %v744_v3 = vmul.f32 %v743_v5, %v2118_v58 }
 0x10f   : > { %v730_v21 = vadd.f32 %v728_v12, %v724_v63  ;;  %v807_v31 = vstv %s2300_s30  ;;  %v805_v62 = vmul.f32 %v803_v13, %v2103_v51  ;;  %s2365_s30 = sld [smem:[#allocation5 + $0x22]] }
 0x110   : > { %v731_v39 = vadd.f32 %v729_v16, %v725_v11  ;;  %v711_v44 = vadd.f32 %v709_v29, %v705_v28  ;;  %v859_v28 = vstv %s2308_s29  ;;  %v839_v29 = vstv %s2310_s4  ;;  %s2373_s29 = sld [smem:[#allocation5 + $0x53]] }
 0x111   : > { %s2381_s4 = sld [smem:[#allocation5 + $0x25]] }
 0x112   : > { %v783_v40 = vstv %s2271_s25  ;;  %s2336_s25 = sld [smem:[#allocation5 + $0x50]] }
 0x113   : > { %v784_v34 = vmul.f32 %v783_v40, %v2118_v58 }
 0x115   : > { %680 = vrot.lane.b32.xlu0 %v675_v45, %s1745_s8  ;;  %660 = vrot.lane.b32.xlu1 %v655_v35, %s1743_s6  ;;  %v787_v45 = vstv %s2273_s15  ;;  %v763_v35 = vstv %s2275_s16  ;;  %s2344_s15 = sld [smem:[#allocation5 + $0x21]] }
 0x116   : > { %640 = vrot.lane.b32.xlu2 %v635_v50, %s1744_s7  ;;  %v767_v50 = vstv %s2277_s20  ;;  %v788_v48 = vmul.f32 %v787_v45, %v2120_v59  ;;  %v764_v49 = vmul.f32 %v763_v35, %v2118_v58  ;;  %s2347_s16 = sld [smem:[#allocation5 + $0x20]] }
 0x117   : > { %v307_v15 = vpop.permute.xlu2 %306  ;;  %v768_v56 = vmul.f32 %v767_v50, %v2120_v59  ;;  %s2351_s20 = sld [smem:[#allocation5 + $0x52]] }
 0x118   : > { %v312_v60 = vadd.f32 %v307_v15, %v292_v14  ;;  %v748_v14 = vmul.f32 %v747_v26, %v2120_v59  ;;  %v790_v15 = vadd.f32 %v788_v48, %v784_v34  ;;  %v765_v26 = vmul.f32 %v763_v35, %v2103_v51 }
 0x119   : > { %v770_v63 = vadd.f32 %v768_v56, %v764_v49  ;;  %v804_v35 = vmul.f32 %v803_v13, %v2118_v58  ;;  %v883_v58 = vstv %s2336_s25  ;;  %v861_v13 = vmul.f32 %v859_v28, %v2152_v19  ;;  %s2403_s25 = sld [smem:[#allocation5 + $0x26]] }
 0x11a   : > { %v750_v12 = vadd.f32 %v748_v14, %v744_v3  ;;  %v879_v14 = vstv %s2329_s27  ;;  %s2393_s27 = sld [smem:[#allocation5 + $0x55]] }
 0x11d   : > { %734 = vrot.lane.b32.xlu0 %v730_v21, %s1740_s24  ;;  %714 = vrot.lane.b32.xlu1 %v710_v0, %s2606_s26  ;;  %v809_v21 = vmul.f32 %v807_v31, %v2105_v54  ;;  %v785_v0 = vmul.f32 %v783_v40, %v2103_v51  ;;  %v840_v40 = vmul.f32 %v839_v29, %v2158_v24 }
 0x11e   : > { %678 = vrot.lane.b32.xlu2 %v674_v2, %s1745_s8  ;;  %v789_v2 = vmul.f32 %v787_v45, %v2105_v54 }
 0x11f   : > { %v811_v11 = vadd.f32 %v809_v21, %v805_v62  ;;  %v841_v21 = vmul.f32 %v839_v29, %v2152_v19 }
 0x120   : > { %v309_v23 = vpop.permute.xlu2 %308  ;;  %v791_v16 = vadd.f32 %v789_v2, %v785_v0 }
 0x121   : > { %v313_v37 = vadd.f32 %v309_v23, %v293_v6  ;;  %v769_v6 = vmul.f32 %v767_v50, %v2105_v54  ;;  %v808_v50 = vmul.f32 %v807_v31, %v2120_v59 }
 0x123   : > { %v771_v23 = vadd.f32 %v769_v6, %v765_v26  ;;  %v810_v3 = vadd.f32 %v808_v50, %v804_v35 }
 0x125   : > { %756 = vrot.lane.b32.xlu0 %v751_v38, %s1742_s3  ;;  %736 = vrot.lane.b32.xlu1 %v731_v39, %s1740_s24  ;;  %v863_v38 = vstv %s2314_s18  ;;  %v860_v39 = vmul.f32 %v859_v28, %v2158_v24  ;;  %s2385_s18 = sld [smem:[#allocation5 + $0x24]] }
 0x126   : > { %716 = vrot.lane.b32.xlu2 %v711_v44, %s2606_s26  ;;  %v864_v34 = vmul.f32 %v863_v38, %v2160_v27  ;;  %v865_v31 = vmul.f32 %v863_v38, %v2154_v20 }
 0x128   : > { %v347_v30 = vpop.permute.xlu2 %346  ;;  %v866_v56 = vadd.f32 %v864_v34, %v860_v39 }
 0x12d   : > { %794 = vrot.lane.b32.xlu0 %v790_v15, %s1743_s6  ;;  %774 = vrot.lane.b32.xlu1 %v770_v63, %s1744_s7  ;;  %v881_v63 = vmul.f32 %v879_v14, %v2152_v19 }
 0x12e   : > { %754 = vrot.lane.b32.xlu2 %v750_v12, %s1742_s3  ;;  %v885_v12 = vmul.f32 %v883_v58, %v2154_v20 }
 0x12f   : > { %v327_v61 = vpop.permute.xlu0 %326 }
 0x130   : > { %v369_v5 = vpop.permute.xlu2 %368  ;;  %v332_v25 = vadd.f32 %v327_v61, %v312_v60  ;;  %v843_v60 = vstv %s2319_s5  ;;  %s2389_s5 = sld [smem:[#allocation5 + $0x56]] }
 0x131   : > { %v844_v48 = vmul.f32 %v843_v60, %v2160_v27  ;;  %v845_v0 = vmul.f32 %v843_v60, %v2154_v20 }
 0x132   : > { %v352_v9 = vadd.f32 %v347_v30, %v332_v25  ;;  %v867_v25 = vadd.f32 %v865_v31, %v861_v13 }
 0x133   : > { %v846_v30 = vadd.f32 %v844_v48, %v840_v40  ;;  %v847_v6 = vadd.f32 %v845_v0, %v841_v21  ;;  %v880_v40 = vmul.f32 %v879_v14, %v2158_v24 }
 0x135   : > { %816 = vrot.lane.b32.xlu0 %v811_v11, %s1745_s8  ;;  %796 = vrot.lane.b32.xlu1 %v791_v16, %s1743_s6  ;;  %v919_v11 = vstv %s2344_s15  ;;  %v899_v16 = vstv %s2347_s16  ;;  %s2410_s15 = sld [smem:[#allocation5 + $0x57]] }
 0x136   : > { %776 = vrot.lane.b32.xlu2 %v771_v23, %s1744_s7  ;;  %v903_v23 = vstv %s2355_s23  ;;  %v920_v60 = vmul.f32 %v919_v11, %v2158_v24  ;;  %v901_v13 = vmul.f32 %v899_v16, %v2152_v19  ;;  %s2418_s16 = sld [smem:[#allocation5 + $0x28]] }
 0x137   : > { %v329_v51 = vpop.permute.xlu1 %328  ;;  %v349_v54 = vpop.permute.xlu0 %348  ;;  %v905_v31 = vmul.f32 %v903_v23, %v2154_v20  ;;  %s2425_s23 = sld [smem:[#allocation5 + $0x59]] }
 0x138   : > { %v333_v44 = vadd.f32 %v329_v51, %v313_v37  ;;  %v407_v45 = vpop.permute.xlu2 %406  ;;  %v900_v51 = vmul.f32 %v899_v16, %v2158_v24 }
 0x139   : > { %v907_v0 = vadd.f32 %v905_v31, %v901_v13 }
 0x13a   : > { %v353_v49 = vadd.f32 %v349_v54, %v333_v44 }
 0x13c   : > { %v373_v15 = vadd.f32 %v369_v5, %v353_v49  ;;  %v887_v5 = vadd.f32 %v885_v12, %v881_v63 }
 0x13d   : > { %870 = vrot.lane.b32.xlu0 %v866_v56, %s1740_s24  ;;  %850 = vrot.lane.b32.xlu1 %v846_v30, %s2606_s26  ;;  %v939_v56 = vstv %s2365_s30  ;;  %v943_v30 = vstv %s2373_s29  ;;  %s2429_s30 = sld [smem:[#allocation5 + $0x58]] }
 0x13e   : > { %814 = vrot.lane.b32.xlu2 %v810_v3, %s1745_s8  ;;  %s2439_s29 = sld [smem:[#allocation5 + $0x29]] }
 0x13f   : > { %v367_v59 = vpop.permute.xlu1 %366  ;;  %v387_v37 = vpop.permute.xlu0 %386 }
 0x140   : > { %v372_v61 = vadd.f32 %v367_v59, %v352_v9  ;;  %v445_v62 = vpop.permute.xlu2 %444  ;;  %v923_v9 = vstv %s2351_s20  ;;  %v921_v59 = vmul.f32 %v919_v11, %v2152_v19  ;;  %s2421_s20 = sld [smem:[#allocation5 + $0x27]] }
 0x141   : > { %v924_v44 = vmul.f32 %v923_v9, %v2160_v27 }
 0x142   : > { %v392_v2 = vadd.f32 %v387_v37, %v372_v61  ;;  %v925_v37 = vmul.f32 %v923_v9, %v2154_v20 }
 0x143   : > { %v926_v50 = vadd.f32 %v924_v44, %v920_v60  ;;  %v1015_v44 = vstv %s2403_s25  ;;  %v1039_v13 = vstv %s2429_s30  ;;  %s2467_s25 = sld [smem:[#allocation5 + $0x5c]] }
 0x144   : > { %v412_v26 = vadd.f32 %v407_v45, %v392_v2  ;;  %v904_v45 = vmul.f32 %v903_v23, %v2160_v27  ;;  %v927_v21 = vadd.f32 %v925_v37, %v921_v59  ;;  %v995_v2 = vstv %s2381_s4  ;;  %s2447_s4 = sld [smem:[#allocation5 + $0x5a]] }
 0x145   : > { %892 = vrot.lane.b32.xlu0 %v887_v5, %s1742_s3  ;;  %872 = vrot.lane.b32.xlu1 %v867_v25, %s1740_s24  ;;  %v975_v5 = vstv %s2385_s18  ;;  %v996_v11 = vmul.f32 %v995_v2, %v2170_v32  ;;  %v1055_v37 = vstv %s2418_s16  ;;  %s2455_s18 = sld [smem:[#allocation5 + $0x2c]] }
 0x146   : > { %852 = vrot.lane.b32.xlu2 %v847_v6, %s2606_s26  ;;  %v428_v28 = vadd.f32 %v2041_v10, %v412_v26  ;;  %v884_v10 = vmul.f32 %v883_v58, %v2160_v27  ;;  %v906_v34 = vadd.f32 %v904_v45, %v900_v51  ;;  %v945_v58 = vmul.f32 %v943_v30, %v2154_v20  ;;  %s2484_s16 = sld [smem:[#allocation5 + $0x5e]] }
 0x147   : > { %v389_v29 = vpop.permute.xlu1 %388  ;;  %v409_v38 = vpop.permute.xlu0 %408  ;;  %v999_v26 = vstv %s2389_s5  ;;  %v979_v6 = vstv %s2393_s27  ;;  %v976_v16 = vmul.f32 %v975_v5, %v2170_v32  ;;  %v944_v51 = vmul.f32 %v943_v30, %v2160_v27  ;;  %s2459_s5 = sld [smem:[#allocation5 + $0x2b]] }
 0x148   : > { %v393_v54 = vadd.f32 %v389_v29, %v373_v15  ;;  %v483_v39 = vpop.permute.xlu2 %482  ;;  %v886_v49 = vadd.f32 %v884_v10, %v880_v40  ;;  %v941_v15 = vmul.f32 %v939_v56, %v2152_v19  ;;  %v1000_v29 = vmul.f32 %v999_v26, %v2181_v41  ;;  %s2463_s27 = sld [smem:[#allocation5 + $0x5d]] }
 0x149   : > { %v1017_v10 = vmul.f32 %v1015_v44, %v2172_v33  ;;  %v977_v30 = vmul.f32 %v975_v5, %v2172_v33  ;;  %s2499_s30 = sld [smem:[#allocation5 + $0x60]] }
 0x14a   : > { %v413_v35 = vadd.f32 %v409_v38, %v393_v54  ;;  %v980_v38 = vmul.f32 %v979_v6, %v2181_v41  ;;  %v1002_v54 = vadd.f32 %v1000_v29, %v996_v11 }
 0x14c   : > { %v429_v48 = vadd.f32 %v2020_v1, %v413_v35 }
 0x14d   : > { %930 = vrot.lane.b32.xlu0 %v926_v50, %s1743_s6  ;;  %910 = vrot.lane.b32.xlu1 %v906_v34, %s1744_s7  ;;  %v997_v34 = vmul.f32 %v995_v2, %v2172_v33 }
 0x14e   : > { %890 = vrot.lane.b32.xlu2 %v886_v49, %s1742_s3  ;;  %v449_v3 = vadd.f32 %v445_v62, %v429_v48  ;;  %v947_v62 = vadd.f32 %v945_v58, %v941_v15  ;;  %v1001_v48 = vmul.f32 %v999_v26, %v2183_v42 }
 0x14f   : > { %v443_v14 = vpop.permute.xlu1 %442  ;;  %v463_v1 = vpop.permute.xlu0 %462 }
 0x150   : > { %v448_v63 = vadd.f32 %v443_v14, %v428_v28  ;;  %v505_v12 = vpop.permute.xlu2 %504  ;;  %v940_v28 = vmul.f32 %v939_v56, %v2158_v24  ;;  %v1019_v24 = vstv %s2410_s15  ;;  %v1003_v15 = vadd.f32 %v1001_v48, %v997_v34  ;;  %s2477_s15 = sld [smem:[#allocation5 + $0x2d]] }
 0x151   : > { %v1021_v50 = vmul.f32 %v1019_v24, %v2183_v42  ;;  %v1131_v34 = vstv %s2455_s18  ;;  %v1111_v48 = vstv %s2459_s5  ;;  %s2521_s18 = sld [smem:[#allocation5 + $0x61]] }
 0x152   : > { %v468_v61 = vadd.f32 %v463_v1, %v448_v63  ;;  %v946_v40 = vadd.f32 %v944_v51, %v940_v28  ;;  %v1035_v63 = vstv %s2421_s20  ;;  %v1079_v28 = vstv %s2447_s4  ;;  %s2492_s20 = sld [smem:[#allocation5 + $0x2f]] }
 0x153   : > { %v1023_v1 = vadd.f32 %v1021_v50, %v1017_v10  ;;  %v1081_v51 = vmul.f32 %v1079_v28, %v2183_v42  ;;  %s2513_s4 = sld [smem:[#allocation5 + $0x30]] }
 0x154   : > { %v488_v25 = vadd.f32 %v483_v39, %v468_v61  ;;  %v982_v39 = vadd.f32 %v980_v38, %v976_v16 }
 0x155   : > { %952 = vrot.lane.b32.xlu0 %v947_v62, %s1745_s8  ;;  %932 = vrot.lane.b32.xlu1 %v927_v21, %s1743_s6  ;;  %v1056_v21 = vmul.f32 %v1055_v37, %v2170_v32 }
 0x156   : > { %912 = vrot.lane.b32.xlu2 %v907_v0, %s1744_s7  ;;  %v1036_v0 = vmul.f32 %v1035_v63, %v2170_v32 }
 0x157   : > { %v465_v19 = vpop.permute.xlu1 %464  ;;  %v485_v20 = vpop.permute.xlu0 %484 }
 0x158   : > { %v469_v9 = vadd.f32 %v465_v19, %v449_v3  ;;  %v543_v23 = vpop.permute.xlu2 %542  ;;  %v981_v3 = vmul.f32 %v979_v6, %v2183_v42  ;;  %v1040_v6 = vmul.f32 %v1039_v13, %v2181_v41 }
 0x15a   : > { %v489_v60 = vadd.f32 %v485_v20, %v469_v9  ;;  %v983_v59 = vadd.f32 %v981_v3, %v977_v30  ;;  %v1042_v11 = vadd.f32 %v1040_v6, %v1036_v0  ;;  %v1115_v30 = vstv %s2467_s25 }
 0x15b   : > { %v1132_v3 = vmul.f32 %v1131_v34, %v2189_v43 }
 0x15c   : > { %v509_v45 = vadd.f32 %v505_v12, %v489_v60  ;;  %v1059_v12 = vstv %s2425_s23  ;;  %s2495_s23 = sld [smem:[#allocation5 + $0x2e]] }
 0x15d   : > { %1006 = vrot.lane.b32.xlu0 %v1002_v54, %s1740_s24  ;;  %986 = vrot.lane.b32.xlu1 %v982_v39, %s2606_s26  ;;  %v1060_v26 = vmul.f32 %v1059_v12, %v2181_v41  ;;  %v1057_v54 = vmul.f32 %v1055_v37, %v2172_v33  ;;  %v1061_v39 = vmul.f32 %v1059_v12, %v2183_v42 }
 0x15e   : > { %950 = vrot.lane.b32.xlu2 %v946_v40, %s1745_s8  ;;  %v1116_v37 = vmul.f32 %v1115_v30, %v2198_v52  ;;  %v1080_v12 = vmul.f32 %v1079_v28, %v2181_v41 }
 0x15f   : > { %v503_v27 = vpop.permute.xlu1 %502  ;;  %v523_v35 = vpop.permute.xlu0 %522  ;;  %v1062_v20 = vadd.f32 %v1060_v26, %v1056_v21  ;;  %v1063_v10 = vadd.f32 %v1061_v39, %v1057_v54 }
 0x160   : > { %v508_v49 = vadd.f32 %v503_v27, %v488_v25  ;;  %v581_v56 = vpop.permute.xlu2 %580  ;;  %v1016_v25 = vmul.f32 %v1015_v44, %v2170_v32 }
 0x162   : > { %v528_v14 = vadd.f32 %v523_v35, %v508_v49 }
 0x164   : > { %v548_v58 = vadd.f32 %v543_v23, %v528_v14  ;;  %v1075_v23 = vstv %s2439_s29  ;;  %v1112_v14 = vmul.f32 %v1111_v48, %v2189_v43  ;;  %s2503_s29 = sld [smem:[#allocation5 + $0x5f]] }
 0x165   : > { %1028 = vrot.lane.b32.xlu0 %v1023_v1, %s1742_s3  ;;  %1008 = vrot.lane.b32.xlu1 %v1003_v15, %s1740_s24  ;;  %v1077_v60 = vmul.f32 %v1075_v23, %v2172_v33 }
 0x166   : > { %988 = vrot.lane.b32.xlu2 %v983_v59, %s2606_s26  ;;  %v564_v31 = vadd.f32 %v2082_v46, %v548_v58  ;;  %v1020_v46 = vmul.f32 %v1019_v24, %v2181_v41  ;;  %v1041_v24 = vmul.f32 %v1039_v13, %v2183_v42  ;;  %v1076_v58 = vmul.f32 %v1075_v23, %v2170_v32 }
 0x167   : > { %v525_v61 = vpop.permute.xlu1 %524  ;;  %v545_v62 = vpop.permute.xlu0 %544  ;;  %v1083_v35 = vadd.f32 %v1081_v51, %v1077_v60  ;;  %v1155_v32 = vstv %s2484_s16 }
 0x168   : > { %v529_v2 = vadd.f32 %v525_v61, %v509_v45  ;;  %v619_v5 = vpop.permute.xlu2 %618  ;;  %v1022_v9 = vadd.f32 %v1020_v46, %v1016_v25  ;;  %v1037_v45 = vmul.f32 %v1035_v63, %v2172_v33  ;;  %v1082_v61 = vadd.f32 %v1080_v12, %v1076_v58 }
 0x169   : > { %v1133_v25 = vmul.f32 %v1131_v34, %v2191_v47  ;;  %v1113_v46 = vmul.f32 %v1111_v48, %v2191_v47 }
 0x16a   : > { %v549_v19 = vadd.f32 %v545_v62, %v529_v2  ;;  %v1043_v50 = vadd.f32 %v1041_v24, %v1037_v45  ;;  %v1151_v62 = vstv %s2477_s15  ;;  %v1175_v60 = vstv %s2503_s29 }
 0x16b   : > { %v1153_v2 = vmul.f32 %v1151_v62, %v2191_v47  ;;  %v1177_v12 = vmul.f32 %v1175_v60, %v2200_v53 }
 0x16c   : > { %v565_v16 = vadd.f32 %v2069_v36, %v549_v19 }
 0x16d   : > { %1066 = vrot.lane.b32.xlu0 %v1062_v20, %s1743_s6  ;;  %1046 = vrot.lane.b32.xlu1 %v1042_v11, %s1744_s7  ;;  %v1117_v20 = vmul.f32 %v1115_v30, %v2200_v53  ;;  %v1211_v30 = vstv %s2513_s4 }
 0x16e   : > { %1026 = vrot.lane.b32.xlu2 %v1022_v9, %s1742_s3  ;;  %v585_v29 = vadd.f32 %v581_v56, %v565_v16  ;;  %v1135_v56 = vstv %s2463_s27  ;;  %s1271_s27 = scalar_lea.sflag [#allocation7], %s1868_s17 }
 0x16f   : > { %v579_v38 = vpop.permute.xlu1 %578  ;;  %v599_v36 = vpop.permute.xlu0 %598  ;;  %v1136_v59 = vmul.f32 %v1135_v56, %v2198_v52  ;;  %v1137_v26 = vmul.f32 %v1135_v56, %v2200_v53  ;;  %v1119_v28 = vadd.f32 %v1117_v20, %v1113_v46 }
 0x170   : > { %v584_v40 = vadd.f32 %v579_v38, %v564_v31  ;;  %v641_v44 = vpop.permute.xlu2 %640  ;;  %v1118_v31 = vadd.f32 %v1116_v37, %v1112_v14  ;;  %v1171_v38 = vstv %s2495_s23  ;;  %s1666_s23 = scalar_lea.hbm %s2596_s2, 32 }
 0x171   : > { %v1138_v13 = vadd.f32 %v1136_v59, %v1132_v3  ;;  %v1139_v9 = vadd.f32 %v1137_v26, %v1133_v25 }
 0x172   : > { %v604_v27 = vadd.f32 %v599_v36, %v584_v40  ;;  %v1195_v36 = vstv %s2499_s30 }
 0x174   : > { %v624_v49 = vadd.f32 %v619_v5, %v604_v27  ;;  %v1157_v5 = vmul.f32 %v1155_v32, %v2200_v53  ;;  %v1152_v27 = vmul.f32 %v1151_v62, %v2189_v43 }
 0x175   : > { %1088 = vrot.lane.b32.xlu0 %v1083_v35, %s1745_s8  ;;  %1068 = vrot.lane.b32.xlu1 %v1063_v10, %s1743_s6  ;;  %v1196_v35 = vmul.f32 %v1195_v36, %v2198_v52  ;;  %v1176_v10 = vmul.f32 %v1175_v60, %v2198_v52 }
 0x176   : > { %1048 = vrot.lane.b32.xlu2 %v1043_v50, %s1744_s7  ;;  %v1159_v16 = vadd.f32 %v1157_v5, %v1153_v2  ;;  %v1212_v5 = vmul.f32 %v1211_v30, %v2189_v43 }
 0x177   : > { %v601_v33 = vpop.permute.xlu1 %600  ;;  %v621_v42 = vpop.permute.xlu0 %620 }
 0x178   : > { %v605_v1 = vadd.f32 %v601_v33, %v585_v29  ;;  %v679_v15 = vpop.permute.xlu2 %678  ;;  %v1191_v29 = vstv %s2492_s20  ;;  %v1215_v33 = vstv %s2521_s18 }
 0x179   : > { %v1192_v40 = vmul.f32 %v1191_v29, %v2189_v43  ;;  %v1193_v58 = vmul.f32 %v1191_v29, %v2191_v47 }
 0x17a   : > { %v625_v63 = vadd.f32 %v621_v42, %v605_v1  ;;  %v1213_v1 = vmul.f32 %v1211_v30, %v2191_v47 }
 0x17b   : > { %v1198_v34 = vadd.f32 %v1196_v35, %v1192_v40 }
 0x17c   : > { %v645_v21 = vadd.f32 %v641_v44, %v625_v63  ;;  %v1172_v44 = vmul.f32 %v1171_v38, %v2189_v43  ;;  %v1173_v63 = vmul.f32 %v1171_v38, %v2191_v47 }
 0x17d   : > { %1142 = vrot.lane.b32.xlu0 %v1138_v13, %s1740_s24  ;;  %1122 = vrot.lane.b32.xlu1 %v1118_v31, %s2606_s26 }
 0x17e   : > { %1086 = vrot.lane.b32.xlu2 %v1082_v61, %s1745_s8  ;;  %v1178_v48 = vadd.f32 %v1176_v10, %v1172_v44  ;;  %v1179_v62 = vadd.f32 %v1177_v12, %v1173_v63 }
 0x17f   : > { %v639_v41 = vpop.permute.xlu1 %638  ;;  %v659_v0 = vpop.permute.xlu0 %658 }
 0x180   : > { %v644_v6 = vadd.f32 %v639_v41, %v624_v49  ;;  %v717_v19 = vpop.permute.xlu2 %716 }
 0x182   : > { %v664_v11 = vadd.f32 %v659_v0, %v644_v6 }
 0x184   : > { %v684_v23 = vadd.f32 %v679_v15, %v664_v11  ;;  %v1217_v15 = vmul.f32 %v1215_v33, %v2200_v53 }
 0x185   : > { %1164 = vrot.lane.b32.xlu0 %v1159_v16, %s1742_s3  ;;  %1144 = vrot.lane.b32.xlu1 %v1139_v9, %s1740_s24  ;;  %s1393_s24 = sshll.u32 %s1868_s17, 4 }
 0x186   : > { %1124 = vrot.lane.b32.xlu2 %v1119_v28, %s2606_s26  ;;  %v700_v51 = vadd.f32 %v2156_v22, %v684_v23  ;;  %v1156_v22 = vmul.f32 %v1155_v32, %v2198_v52  ;;  %v1219_v31 = vadd.f32 %v1217_v15, %v1213_v1 }
 0x187   : > { %v661_v54 = vpop.permute.xlu1 %660  ;;  %v681_v39 = vpop.permute.xlu0 %680 }
 0x188   : > { %v665_v45 = vadd.f32 %v661_v54, %v645_v21  ;;  %v755_v24 = vpop.permute.xlu2 %754  ;;  %v1158_v56 = vadd.f32 %v1156_v22, %v1152_v27 }
 0x18a   : > { %v685_v50 = vadd.f32 %v681_v39, %v665_v45 }
 0x18c   : > { %v701_v49 = vadd.f32 %v2131_v4, %v685_v50  ;;  %v1197_v4 = vmul.f32 %v1195_v36, %v2200_v53  ;;  %v1216_v53 = vmul.f32 %v1215_v33, %v2198_v52 }
 0x18d   : > { %1202 = vrot.lane.b32.xlu0 %v1198_v34, %s1743_s6  ;;  %1182 = vrot.lane.b32.xlu1 %v1178_v48, %s1744_s7 }
 0x18e   : > { %1162 = vrot.lane.b32.xlu2 %v1158_v56, %s1742_s3  ;;  %v721_v42 = vadd.f32 %v717_v19, %v701_v49  ;;  %v1199_v61 = vadd.f32 %v1197_v4, %v1193_v58  ;;  %v1218_v25 = vadd.f32 %v1216_v53, %v1212_v5  ;;  %s1506_s3 = sshll.u32 %s1724_s12, 4  ;;  %s194_s12 = scalar_lea.vmem [#allocation10], %s1393_s24 }
 0x18f   : > { %v715_v3 = vpop.permute.xlu1 %714  ;;  %v735_v14 = vpop.permute.xlu0 %734  ;;  %s1283_s26 = sshll.u32 %s194_s12, 4  ;;  %s1284_s26 = int_to_ptr.vmem [resolvable:$true] %s1283_s26 }
 0x190   : > { %v720_v59 = vadd.f32 %v715_v3, %v700_v51  ;;  %v777_v37 = vpop.permute.xlu2 %776 }
 0x192   : > { %v740_v13 = vadd.f32 %v735_v14, %v720_v59 }
 0x194   : > { %v760_v21 = vadd.f32 %v755_v24, %v740_v13 }
 0x195   : > { %1224 = vrot.lane.b32.xlu0 %v1219_v31, %s1745_s8  ;;  %1204 = vrot.lane.b32.xlu1 %v1199_v61, %s1743_s6 }
 0x196   : > { %1184 = vrot.lane.b32.xlu2 %v1179_v62, %s1744_s7 }
 0x197   : > { %v737_v32 = vpop.permute.xlu1 %736  ;;  %v757_v41 = vpop.permute.xlu0 %756 }
 0x198   : > { %v741_v0 = vadd.f32 %v737_v32, %v721_v42  ;;  %v815_v2 = vpop.permute.xlu2 %814 }
 0x19a   : > { %v761_v47 = vadd.f32 %v757_v41, %v741_v0 }
 0x19c   : > { %v781_v26 = vadd.f32 %v777_v37, %v761_v47 }
 0x19e   : > { %1222 = vrot.lane.b32.xlu2 %v1218_v25, %s1745_s8  ;;  %s1282_s8 = scalar_lea.hbm %s2596_s2, %s1506_s3 }
 0x19f   : > { %v775_v6 = vpop.permute.xlu1 %774  ;;  %v795_v19 = vpop.permute.xlu0 %794  ;;  %s1285_s5 = sshll.u32 %s1282_s8, 4  ;;  %s1286_s5 = int_to_ptr.hbm [resolvable:$true] %s1285_s5 }
 0x1a0   : > { %v780_v46 = vadd.f32 %v775_v6, %v760_v21  ;;  %v853_v20 = vpop.permute.xlu2 %852  ;;  %s1660_s25 = sshra.s32 %s1286_s5, 4  ;;  %s1661_s25 = int_to_ptr.hbm [resolvable:$true] %s1660_s25 }
 0x1a1   : > { %s1662_s15 = scalar_lea.hbm %s1661_s25, 16  ;;  %p1667_p11 = scmp.lt.s32.totalorder %s1661_s25, %s2596_s2 }
 0x1a2   : > { %v800_v11 = vadd.f32 %v795_v19, %v780_v46  ;;  %p1663_p3 = scmp.ne.s32.totalorder %s1661_s25, %s1662_s15  ;;  %p1668_p12 = scmp.lt.s32.totalorder %s1666_s23, %s1662_s15 }
 0x1a4   : > { %v820_v16 = vadd.f32 %v815_v2, %v800_v11  ;;  %p1664_p5 = pnand %p1663_p3, %p1815_p8  ;;  %p1669_p0 = por %p1668_p12, %p1667_p11 }
 0x1a6   : > { %v836_v9 = vadd.f32 %v2209_v57, %v820_v16  ;;  %p1665_p7 = pneg %p1664_p5 }
 0x1a7   : > { %v797_v23 = vpop.permute.xlu1 %796  ;;  %v817_v28 = vpop.permute.xlu0 %816 }
 0x1a8   : > { %v801_v29 = vadd.f32 %v797_v23, %v781_v26  ;;  %v891_v38 = vpop.permute.xlu2 %890  ;;  %p1670_p1 = pnand %p1669_p0, %p1665_p7 }
 0x1aa   : > { %v821_v43 = vadd.f32 %v817_v28, %v801_v29 }
 0x1ac   : > { %v837_v36 = vadd.f32 %v2202_v55, %v821_v43 }
 0x1ae   : > { %v857_v24 = vadd.f32 %v853_v20, %v837_v36 }
 0x1af   : > { %v851_v52 = vpop.permute.xlu1 %850  ;;  %v871_v60 = vpop.permute.xlu0 %870 }
 0x1b0   : > { %v913_v51 = vpop.permute.xlu2 %912  ;;  %v856_v54 = vadd.f32 %v851_v52, %v836_v9 }
 0x1b2   : > { %v876_v45 = vadd.f32 %v871_v60, %v856_v54 }
 0x1b4   : > { %v896_v35 = vadd.f32 %v891_v38, %v876_v45 }
 0x1b7   : > { %v873_v39 = vpop.permute.xlu1 %872  ;;  %v893_v40 = vpop.permute.xlu0 %892 }
 0x1b8   : > { %v951_v44 = vpop.permute.xlu2 %950  ;;  %v877_v27 = vadd.f32 %v873_v39, %v857_v24 }
 0x1ba   : > { %v897_v34 = vadd.f32 %v893_v40, %v877_v27 }
 0x1bc   : > { %v917_v56 = vadd.f32 %v913_v51, %v897_v34 }
 0x1bf   : > { %v911_v10 = vpop.permute.xlu1 %910  ;;  %v931_v57 = vpop.permute.xlu0 %930 }
 0x1c0   : > { %v916_v50 = vadd.f32 %v911_v10, %v896_v35  ;;  %v989_v22 = vpop.permute.xlu2 %988 }
 0x1c2   : > { %v936_v48 = vadd.f32 %v931_v57, %v916_v50 }
 0x1c4   : > { %v956_v49 = vadd.f32 %v951_v44, %v936_v48 }
 0x1c6   : > { %v972_v55 = vadd.f32 %v2223_v8, %v956_v49 }
 0x1c7   : > { %v933_v30 = vpop.permute.xlu1 %932  ;;  %v953_v33 = vpop.permute.xlu0 %952 }
 0x1c8   : > { %v937_v42 = vadd.f32 %v933_v30, %v917_v56  ;;  %v1027_v3 = vpop.permute.xlu2 %1026 }
 0x1ca   : > { %v957_v14 = vadd.f32 %v953_v33, %v937_v42 }
 0x1cc   : > { %v973_v1 = vadd.f32 %v2221_v7, %v957_v14 }
 0x1ce   : > { %v993_v31 = vadd.f32 %v989_v22, %v973_v1 }
 0x1cf   : > { %v987_v15 = vpop.permute.xlu1 %986  ;;  %v1007_v58 = vpop.permute.xlu0 %1006 }
 0x1d0   : > { %v1049_v4 = vpop.permute.xlu2 %1048  ;;  %v992_v59 = vadd.f32 %v987_v15, %v972_v55 }
 0x1d2   : > { %v1012_v12 = vadd.f32 %v1007_v58, %v992_v59 }
 0x1d4   : > { %v1032_v62 = vadd.f32 %v1027_v3, %v1012_v12 }
 0x1d7   : > { %v1009_v37 = vpop.permute.xlu1 %1008  ;;  %v1029_v63 = vpop.permute.xlu0 %1028 }
 0x1d8   : > { %v1087_v13 = vpop.permute.xlu2 %1086  ;;  %v1013_v61 = vadd.f32 %v1009_v37, %v993_v31 }
 0x1da   : > { %v1033_v41 = vadd.f32 %v1029_v63, %v1013_v61 }
 0x1dc   : > { %v1053_v47 = vadd.f32 %v1049_v4, %v1033_v41 }
 0x1df   : > { %v1047_v21 = vpop.permute.xlu1 %1046  ;;  %v1067_v8 = vpop.permute.xlu0 %1066 }
 0x1e0   : > { %v1052_v32 = vadd.f32 %v1047_v21, %v1032_v62  ;;  %v1125_v2 = vpop.permute.xlu2 %1124 }
 0x1e2   : > { %v1072_v0 = vadd.f32 %v1067_v8, %v1052_v32 }
 0x1e4   : > { %v1092_v5 = vadd.f32 %v1087_v13, %v1072_v0 }
 0x1e6   : > { %v1108_v7 = vadd.f32 %v2233_v18, %v1092_v5 }
 0x1e7   : > { %v1069_v53 = vpop.permute.xlu1 %1068  ;;  %v1089_v25 = vpop.permute.xlu0 %1088 }
 0x1e8   : > { %v1073_v26 = vadd.f32 %v1069_v53, %v1053_v47  ;;  %v1163_v46 = vpop.permute.xlu2 %1162 }
 0x1ea   : > { %v1093_v6 = vadd.f32 %v1089_v25, %v1073_v26 }
 0x1ec   : > { %v1109_v19 = vadd.f32 %v2231_v17, %v1093_v6 }
 0x1ee   : > { %v1129_v38 = vadd.f32 %v1125_v2, %v1109_v19 }
 0x1ef   : > { %v1123_v20 = vpop.permute.xlu1 %1122  ;;  %v1143_v11 = vpop.permute.xlu0 %1142 }
 0x1f0   : > { %v1128_v16 = vadd.f32 %v1123_v20, %v1108_v7  ;;  %v1185_v28 = vpop.permute.xlu2 %1184 }
 0x1f2   : > { %v1148_v29 = vadd.f32 %v1143_v11, %v1128_v16 }
 0x1f4   : > { %v1168_v36 = vadd.f32 %v1163_v46, %v1148_v29 }
 0x1f7   : > { %v1145_v9 = vpop.permute.xlu1 %1144  ;;  %v1165_v23 = vpop.permute.xlu0 %1164 }
 0x1f8   : > { %v1149_v43 = vadd.f32 %v1145_v9, %v1129_v38  ;;  %v1223_v39 = vpop.permute.xlu2 %1222 }
 0x1fa   : > { %v1169_v51 = vadd.f32 %v1165_v23, %v1149_v43 }
 0x1fc   : > { %v1189_v17 = vadd.f32 %v1185_v28, %v1169_v51 }
 0x1ff   : > { %v1183_v52 = vpop.permute.xlu1 %1182  ;;  %v1203_v60 = vpop.permute.xlu0 %1202 }
 0x200   : > { %v1188_v18 = vadd.f32 %v1183_v52, %v1168_v36 }
 0x202   : > { %v1208_v54 = vadd.f32 %v1203_v60, %v1188_v18 }
 0x204   : > { %v1228_v40 = vadd.f32 %v1223_v39, %v1208_v54 }
 0x206   : > { %v1498_v44 = vmul.f32 -1.442695, %v1228_v40 }
 0x207   : > { %v1205_v45 = vpop.permute.xlu1 %1204  ;;  %v1225_v27 = vpop.permute.xlu0 %1224 }
 0x208   : > { %1593 = vpow2.f32 %v1498_v44  ;;  %v1209_v24 = vadd.f32 %v1205_v45, %v1189_v17 }
 0x20a   : > { %v1229_v35 = vadd.f32 %v1225_v27, %v1209_v24 }
 0x20c   : > { %v1499_v10 = vmul.f32 -1.442695, %v1229_v35 }
 0x20e   : > { %v1594_v57 = vpop.eup %1593  ;;  %1595 = vpow2.f32 %v1499_v10 }
 0x20f   : > { %v1236_v50 = vadd.f32 1.0, %v1594_v57 }
 0x211   : > { %1597 = vrcp.f32 %v1236_v50  ;;  %v1249_v55 = vand.u32 2147483648, %v1236_v50  ;;  %v1247_v33 = vand.u32 2147483647, %v1236_v50  ;;  %vm1243_vm5 = vweird.f32 %v1236_v50 }
 0x213   : > { %v1250_v1 = vor.u32 1.1754944e-38, %v1249_v55  ;;  %vm1248_vm7 = vcmp.eq.f32.partialorder %v1247_v33, 8.507059e+37 }
 0x214   : > { %v1596_v22 = vpop.eup %1595 }
 0x215   : > { %v1237_v34 = vadd.f32 1.0, %v1596_v22 }
 0x217   : > { %v1598_v48 = vpop.eup %1597  ;;  %1599 = vrcp.f32 %v1237_v34  ;;  %v1264_v4 = vand.u32 2147483648, %v1237_v34  ;;  %v1262_v63 = vand.u32 2147483647, %v1237_v34  ;;  %vm1258_vm9 = vweird.f32 %v1237_v34 }
 0x218   : > { %v1239_v49 = vmul.f32 %v1598_v48, %v1236_v50  ;;  %vm1244_vm4 = vweird.f32 %v1598_v48 }
 0x219   : > { %vm1245_vm6 = vmor %vm1243_vm5, %vm1244_vm4  ;;  %v1265_v13 = vor.u32 1.1754944e-38, %v1264_v4  ;;  %vm1263_vm11 = vcmp.eq.f32.partialorder %v1262_v63, 8.507059e+37 }
 0x21a   : > { %v1240_v56 = vsub.f32 1.0, %v1239_v49 }
 0x21c   : > { %v1241_v30 = vmul.f32 %v1598_v48, %v1240_v56 }
 0x21d   : > { %v1600_v42 = vpop.eup %1599 }
 0x21e   : > { %v1254_v3 = vmul.f32 %v1600_v42, %v1237_v34  ;;  %v1242_v14 = vadd.f32 %v1598_v48, %v1241_v30  ;;  %vm1259_vm8 = vweird.f32 %v1600_v42 }
 0x21f   : > { %vm1260_vm10 = vmor %vm1258_vm9, %vm1259_vm8 }
 0x220   : > { %v1255_v15 = vsub.f32 1.0, %v1254_v3  ;;  %v1246_v58 = vsel %vm1245_vm6, %v1598_v48, %v1242_v14 }
 0x221   : > { %v1251_v59 = vsel %vm1248_vm7, %v1250_v1, %v1246_v58 }
 0x222   : > { %v1256_v37 = vmul.f32 %v1600_v42, %v1255_v15  ;;  %1268 = vst.msk [vmem:[%s194_s12] sm:$0xff] %vm200_vm0, %v1251_v59 }
 0x224   : > { %v1257_v12 = vadd.f32 %v1600_v42, %v1256_v37 }
 0x226   : > { %v1261_v31 = vsel %vm1260_vm10, %v1600_v42, %v1257_v12 }
 0x227   : > { %v1266_v61 = vsel %vm1263_vm11, %v1265_v13, %v1261_v31 }
 0x228   : > { %1269 = vst.msk [vmem:[%s194_s12 + $0x8] sm:$0xff] %vm200_vm0, %v1266_v61 }
 0x229   : > { %1673 = shalt.err (!%p1670_p1)
}
 0x22a   : > { %s1746_s17 = smov 128   ;;  %s1747_s4 = smov 8  }
 0x22b   : > { %1513 = dma.vmem_to_hbm [thread:$0]  (%p1815_p8), %s1284_s26, 256, %s1286_s5, %s1271_s27, %s1746_s17, %s1746_s17, %s1747_s4  }
 0x22c PF: > { %s1300_s18 = sand.u32 1, %s1712_s9   ;;  %p1524_p2 = pnand %p1386_p13, %p1819_p9 }
 0x22d   : > { %s1301_s24 = scalar_lea.sflag [#allocation7], %s1300_s18 }
 0x22e   : > { %p1525_p4 = pneg %p1524_p2 }
 0x230   : > { %1707 = dma.done.wait (%p1525_p4), %s1301_s24, 256  }
 0x231   : > { %1709 = vsyncadd (%p1525_p4), %s1301_s24, 4294967040  ;;  %s19_s14 = sadd.s32 1, %s1732_s14   ;;  %s2607_s9 = smov %s1716_s10 }
 0x232   : > { %p16_p6 = scmp.ge.s32.totalorder %s19_s14, 4   ;;  %s2608_s10 = smov %s1720_s11 }
 0x233   : > { %s2609_s11 = smov %s1857_s19  ;;  %s2610_s12 = smov %s1728_s13 }
 0x234   : > { %s2611_s13 = smov %s2613_s28  ;;  %18 = sbr.rel (!%p16_p6) target bundleno = 7 (0x7), region = 90 }
 0x239   :  { %1307 = vsyncpa [#allocation6], 1 }
 0x23a   :  { %1309 = vsyncpa [#allocation6 + $0x1], 1 }
 0x23b   :  { %1310 = vsyncpa [#allocation7], 1 }
 0x23c   :  { %1312 = vsyncpa [#allocation7 + $0x1], 1 }
 0x23d   :  { %1313 = vsyncpa [#allocation8], 1 }
 0x23e   :  { %1315 = vsyncpa [#allocation8 + $0x1], 1 }

</bundles_post_ra>
